<compile_context>
chip_gen: v7x
topology: tpu7x:2x2x1
jax: 0.10.0
libtpu: 0.0.40
codegen_flags: <defaults>
</compile_context>

<pallas_src>
import numpy as np
import jax
import jax.numpy as jnp
from jax.experimental import pallas as pl
from jax.experimental.pallas import tpu as pltpu


def _dft_matrices_shifted(n):
    """Ortho-normalized DFT matrix of size n with fftshift baked into the
    output-frequency (row) axis.  Returns (real, imag) float32 (n, n) arrays."""
    k = np.arange(n)
    ang = -2.0 * np.pi * np.outer(k, k) / n
    f = np.exp(1j * ang) / np.sqrt(n)          # norm='ortho': 1/sqrt(n) per axis
    f = np.roll(f, n // 2, axis=0)             # fftshift on output frequencies
    return np.real(f).astype(np.float32), np.imag(f).astype(np.float32)


def _fft_loss_kernel(fh2_ref, bd_re_ref, bd_im_ref, x_ref, t_ref, out_ref, acc_ref):
    """One grid step = Bn image pairs laid out as (H, Bn*W) slabs.

    fh2_ref   : (2H, H)       fused [F_H_re ; F_H_im]   (left matmul, DFT over H)
    bd_*_ref  : (BnW, BnW)    kron(I_Bn, F_W^T) re/im   (right matmul, DFT over W)
    x_ref/t_ref : (1, H, BnW) native-dtype image slabs
    out_ref   : (1, 8, 128)   per-chunk partial sum (scalar broadcast, lane-dense)
    acc_ref   : (H, BnW) f32  element-wise accumulator, reduced once per chunk
    """
    s = pl.program_id(1)

    @pl.when(s == 0)
    def _():
        acc_ref[...] = jnp.zeros_like(acc_ref)

    fh2 = fh2_ref[...]
    bd_re = bd_re_ref[...]
    bd_im = bd_im_ref[...]
    h = fh2.shape[1]

    # Only DEFAULT (1 bf16 MXU pass, inaccurate) and HIGHEST (fp32 contract) are
    # supported by the Mosaic dot lowering.  HIGHEST keeps full f32 accuracy and
    # the matmuls are not the bottleneck for this loss.
    prec = jax.lax.Precision.HIGHEST

    def magnitude(img):
        # img: (H, BnW) f32.  DFT over H (left matmul), then over W (right matmul
        # against the block-diagonal F_W^T so each image stays in its own lanes).
        y = jnp.dot(fh2, img, preferred_element_type=jnp.float32, precision=prec)   # (2H, BnW)
        p = jnp.dot(y, bd_re, preferred_element_type=jnp.float32, precision=prec)   # (2H, BnW)
        q = jnp.dot(y, bd_im, preferred_element_type=jnp.float32, precision=prec)   # (2H, BnW)
        z_re = p[:h] - q[h:]
        z_im = q[:h] + p[h:]
        return jnp.sqrt(z_re * z_re + z_im * z_im)                                   # (H, BnW)

    mag_x = magnitude(x_ref[0].astype(jnp.float32))
    mag_t = magnitude(t_ref[0].astype(jnp.float32))
    acc_ref[...] += jnp.abs(mag_x - mag_t)

    @pl.when(s == pl.num_programs(1) - 1)
    def _():
        out_ref[...] = jnp.zeros_like(out_ref) + jnp.sum(acc_ref[...])


def _choose_batch(n, h, w):
    """Images per grid step: make the lane axis (Bn*W) ~256 wide while keeping
    the block-diagonal DFT matrices and the input block modest in VMEM."""
    bn = max(1, 256 // w)                                   # lane-density target
    bn = min(bn, max(1, 512 // w))                          # (Bn*W)^2*4B <= ~1 MiB
    bn = min(bn, max(1, (2 << 20) // max(1, h * w * 4)))    # input block <= ~2 MiB
    return max(1, min(bn, n))


def fft_loss(x, t, reduction='mean'):
    """Pallas implementation of FFTLoss.forward for reduction in {'mean', 'sum'}."""
    assert x.shape == t.shape and x.ndim == 4
    B, C, H, W = x.shape
    N = B * C

    bn = _choose_batch(N, H, W)
    n_blocks = -(-N // bn)                  # ceil
    G = 2 if n_blocks >= 2 else 1           # leading "parallel" axis (v7x megacore)
    S = -(-n_blocks // G)
    steps = G * S
    n_pad = steps * bn
    bnw = bn * W

    xr = x.reshape(N, H, W)
    tr = t.reshape(N, H, W)
    if n_pad != N:
        pad = ((0, n_pad - N), (0, 0), (0, 0))
        xr = jnp.pad(xr, pad)               # zero images contribute 0 to the loss
        tr = jnp.pad(tr, pad)

    # (n_pad, H, W) -> (steps, H, bn*W): lane axis carries (image, w).
    # Native dtype kept (no wrapper up-cast); the f32 cast happens in-kernel.
    xc = xr.reshape(steps, bn, H, W).transpose(0, 2, 1, 3).reshape(steps, H, bnw)
    tc = tr.reshape(steps, bn, H, W).transpose(0, 2, 1, 3).reshape(steps, H, bnw)

    fh_re, fh_im = _dft_matrices_shifted(H)
    fw_re, fw_im = _dft_matrices_shifted(W)
    fh2 = jnp.asarray(np.concatenate([fh_re, fh_im], axis=0))         # (2H, H)
    eye = np.eye(bn, dtype=np.float32)
    bd_re = jnp.asarray(np.kron(eye, fw_re.T))                        # (bnw, bnw)
    bd_im = jnp.asarray(np.kron(eye, fw_im.T))                        # (bnw, bnw)

    itemsize = jnp.dtype(x.dtype).itemsize
    # Rough VMEM budget: double-buffered inputs + constant matrices + live temps.
    vmem_need = (2 * 2 * H * bnw * itemsize
                 + 2 * (2 * H * H + 2 * bnw * bnw) * 4
                 + 14 * H * bnw * 4)
    vmem_limit = int(min(64 << 20, max(32 << 20, 2 * vmem_need)))     # cap for v7x

    flops = steps * (2 * 2 * (2 * H) * H * bnw + 4 * 2 * (2 * H) * bnw * bnw)
    cost = pl.CostEstimate(
        flops=int(flops),
        transcendentals=int(steps * 2 * H * bnw),
        bytes_accessed=int(2 * n_pad * H * W * itemsize
                           + (2 * H * H + 2 * bnw * bnw) * 4 + G * 8 * 128 * 4),
    )

    out = pl.pallas_call(
        _fft_loss_kernel,
        out_shape=jax.ShapeDtypeStruct((G, 8, 128), jnp.float32),
        grid_spec=pltpu.PrefetchScalarGridSpec(
            num_scalar_prefetch=0,
            grid=(G, S),
            in_specs=[
                pl.BlockSpec((2 * H, H), lambda g, s: (0, 0)),
                pl.BlockSpec((bnw, bnw), lambda g, s: (0, 0)),
                pl.BlockSpec((bnw, bnw), lambda g, s: (0, 0)),
                pl.BlockSpec((1, H, bnw), lambda g, s: (g * S + s, 0, 0)),
                pl.BlockSpec((1, H, bnw), lambda g, s: (g * S + s, 0, 0)),
            ],
            out_specs=pl.BlockSpec((1, 8, 128), lambda g, s: (g, 0, 0)),
            scratch_shapes=[pltpu.VMEM((H, bnw), jnp.float32)],
        ),
        compiler_params=pltpu.CompilerParams(
            dimension_semantics=("parallel", "arbitrary"),
            vmem_limit_bytes=vmem_limit,
        ),
        cost_estimate=cost,
    )(fh2, bd_re, bd_im, xc, tc)

    total = jnp.sum(out[:, 0, 0])
    if reduction == 'mean':
        return total / (B * C * H * W)
    elif reduction == 'sum':
        return total
    else:
        # TODO(synk): reduction='none' (full per-pixel loss tensor) not wired up; only mean/sum.
        raise NotImplementedError("reduction must be 'mean' or 'sum'")


def _reference_fft_loss(x, t, reduction='mean'):
    # PyTorch's fftshift() with no dims also shifts B/C, but that is a pure
    # permutation applied identically to input and target, so mean/sum match.
    xf = jnp.fft.fftshift(jnp.fft.fft2(x.astype(jnp.float32), norm='ortho'), axes=(-2, -1))
    tf = jnp.fft.fftshift(jnp.fft.fft2(t.astype(jnp.float32), norm='ortho'), axes=(-2, -1))
    loss = jnp.abs(jnp.abs(xf) - jnp.abs(tf))
    return loss.mean() if reduction == 'mean' else loss.sum()


if __name__ == "__main__":
    key = jax.random.PRNGKey(0)
    k1, k2 = jax.random.split(key)
    B, C, H, W = 2, 4, 16, 16
    x = jax.random.normal(k1, (B, C, H, W), dtype=jnp.float32)
    t = jax.random.normal(k2, (B, C, H, W), dtype=jnp.float32)

    loss_mean = jax.block_until_ready(fft_loss(x, t, reduction='mean'))
    loss_sum = jax.block_until_ready(fft_loss(x, t, reduction='sum'))

    ref_mean = jax.block_until_ready(_reference_fft_loss(x, t, 'mean'))
    ref_sum = jax.block_until_ready(_reference_fft_loss(x, t, 'sum'))
    np.testing.assert_allclose(np.asarray(loss_mean), np.asarray(ref_mean), rtol=5e-4, atol=1e-5)
    np.testing.assert_allclose(np.asarray(loss_sum), np.asarray(ref_sum), rtol=5e-4, atol=1e-3)

    print("KERNEL_OK")
</pallas_src>

<mosaic_0001>
module attributes {stable_mosaic.version = 11 : i64} {
  func.func @_fft_loss_kernel(%arg0: i32, %arg1: i32, %arg2: memref<32x16xf32, #tpu.memory_space<vmem>>, %arg3: memref<128x128xf32, #tpu.memory_space<vmem>>, %arg4: memref<128x128xf32, #tpu.memory_space<vmem>>, %arg5: memref<1x16x128xf32, #tpu.memory_space<vmem>>, %arg6: memref<1x16x128xf32, #tpu.memory_space<vmem>>, %arg7: memref<1x8x128xf32, #tpu.memory_space<vmem>>, %arg8: memref<16x128xf32, #tpu.memory_space<vmem>>) attributes {dimension_semantics = [#tpu.dimension_semantics<parallel>, #tpu.dimension_semantics<arbitrary>], iteration_bounds = array<i64: 1, 1>, scalar_prefetch = 0 : i64, scratch_operands = 1 : i64, tpu.core_type = #tpu.core_type<tc>, window_params = [{pipeline_mode = #tpu.pipeline_mode<synchronous>, transform_indices = @transform_0, window_bounds = array<i64: 32, 16>}, {pipeline_mode = #tpu.pipeline_mode<synchronous>, transform_indices = @transform_1, window_bounds = array<i64: 128, 128>}, {pipeline_mode = #tpu.pipeline_mode<synchronous>, transform_indices = @transform_2, window_bounds = array<i64: 128, 128>}, {transform_indices = @transform_3, window_bounds = array<i64: 1, 16, 128>}, {transform_indices = @transform_4, window_bounds = array<i64: 1, 16, 128>}, {transform_indices = @transform_5, window_bounds = array<i64: 1, 8, 128>}]} {
    %c0_i32 = arith.constant 0 : i32
    %0 = arith.cmpi eq, %arg1, %c0_i32 : i32
    %1 = arith.extui %0 : i1 to i32
    %c0_i32_0 = arith.constant 0 : i32
    %2 = arith.cmpi ne, %1, %c0_i32_0 : i32
    scf.if %2 {
      %cst_23 = arith.constant 0.000000e+00 : f32
      %44 = vector.broadcast %cst_23 : f32 to vector<16x128xf32>
      %c0_24 = arith.constant 0 : index
      %c0_25 = arith.constant 0 : index
      %45 = vector.load %arg8[%c0_24, %c0_25] : memref<16x128xf32, #tpu.memory_space<vmem>>, vector<16x128xf32>
      tpu.vector_store %arg8[%c0_24, %c0_25], %44 {strides = array<i32>} : memref<16x128xf32, #tpu.memory_space<vmem>>, vector<16x128xf32>,
    } else {
    }
    %c0 = arith.constant 0 : index
    %c0_1 = arith.constant 0 : index
    %3 = vector.load %arg2[%c0, %c0_1] : memref<32x16xf32, #tpu.memory_space<vmem>>, vector<32x16xf32>
    %c0_2 = arith.constant 0 : index
    %c0_3 = arith.constant 0 : index
    %4 = vector.load %arg3[%c0_2, %c0_3] : memref<128x128xf32, #tpu.memory_space<vmem>>, vector<128x128xf32>
    %c0_4 = arith.constant 0 : index
    %c0_5 = arith.constant 0 : index
    %5 = vector.load %arg4[%c0_4, %c0_5] : memref<128x128xf32, #tpu.memory_space<vmem>>, vector<128x128xf32>
    %c0_6 = arith.constant 0 : index
    %c0_7 = arith.constant 0 : index
    %c0_8 = arith.constant 0 : index
    %6 = vector.load %arg5[%c0_6, %c0_7, %c0_8] : memref<1x16x128xf32, #tpu.memory_space<vmem>>, vector<1x16x128xf32>
    %7 = vector.shape_cast %6 : vector<1x16x128xf32> to vector<16x128xf32>
    %cst = arith.constant dense<0.000000e+00> : vector<32x128xf32>
    %8 = tpu.matmul %3, %7, %cst {dimension_numbers = #tpu.dot_dimension_numbers<[1], [0], [0], [1], [0, 0, 1, 1], [], []>, precision = #tpu.contract_precision<fp32>} : vector<32x16xf32>, vector<16x128xf32>, vector<32x128xf32> -> vector<32x128xf32>
    %cst_9 = arith.constant dense<0.000000e+00> : vector<32x128xf32>
    %9 = tpu.matmul %8, %4, %cst_9 {dimension_numbers = #tpu.dot_dimension_numbers<[1], [0], [0], [1], [0, 0, 1, 1], [], []>, precision = #tpu.contract_precision<fp32>} : vector<32x128xf32>, vector<128x128xf32>, vector<32x128xf32> -> vector<32x128xf32>
    %cst_10 = arith.constant dense<0.000000e+00> : vector<32x128xf32>
    %10 = tpu.matmul %8, %5, %cst_10 {dimension_numbers = #tpu.dot_dimension_numbers<[1], [0], [0], [1], [0, 0, 1, 1], [], []>, precision = #tpu.contract_precision<fp32>} : vector<32x128xf32>, vector<128x128xf32>, vector<32x128xf32> -> vector<32x128xf32>
    %11 = vector.extract_strided_slice %9 {offsets = [0, 0], sizes = [16, 128], strides = [1, 1]} : vector<32x128xf32> to vector<16x128xf32>
    %12 = vector.extract_strided_slice %10 {offsets = [16, 0], sizes = [16, 128], strides = [1, 1]} : vector<32x128xf32> to vector<16x128xf32>
    %13 = arith.subf %11, %12 : vector<16x128xf32>
    %14 = vector.extract_strided_slice %10 {offsets = [0, 0], sizes = [16, 128], strides = [1, 1]} : vector<32x128xf32> to vector<16x128xf32>
    %15 = vector.extract_strided_slice %9 {offsets = [16, 0], sizes = [16, 128], strides = [1, 1]} : vector<32x128xf32> to vector<16x128xf32>
    %16 = arith.addf %14, %15 : vector<16x128xf32>
    %17 = arith.mulf %13, %13 : vector<16x128xf32>
    %18 = arith.mulf %16, %16 : vector<16x128xf32>
    %19 = arith.addf %17, %18 : vector<16x128xf32>
    %20 = math.sqrt %19 : vector<16x128xf32>
    %c0_11 = arith.constant 0 : index
    %c0_12 = arith.constant 0 : index
    %c0_13 = arith.constant 0 : index
    %21 = vector.load %arg6[%c0_11, %c0_12, %c0_13] : memref<1x16x128xf32, #tpu.memory_space<vmem>>, vector<1x16x128xf32>
    %22 = vector.shape_cast %21 : vector<1x16x128xf32> to vector<16x128xf32>
    %cst_14 = arith.constant dense<0.000000e+00> : vector<32x128xf32>
    %23 = tpu.matmul %3, %22, %cst_14 {dimension_numbers = #tpu.dot_dimension_numbers<[1], [0], [0], [1], [0, 0, 1, 1], [], []>, precision = #tpu.contract_precision<fp32>} : vector<32x16xf32>, vector<16x128xf32>, vector<32x128xf32> -> vector<32x128xf32>
    %cst_15 = arith.constant dense<0.000000e+00> : vector<32x128xf32>
    %24 = tpu.matmul %23, %4, %cst_15 {dimension_numbers = #tpu.dot_dimension_numbers<[1], [0], [0], [1], [0, 0, 1, 1], [], []>, precision = #tpu.contract_precision<fp32>} : vector<32x128xf32>, vector<128x128xf32>, vector<32x128xf32> -> vector<32x128xf32>
    %cst_16 = arith.constant dense<0.000000e+00> : vector<32x128xf32>
    %25 = tpu.matmul %23, %5, %cst_16 {dimension_numbers = #tpu.dot_dimension_numbers<[1], [0], [0], [1], [0, 0, 1, 1], [], []>, precision = #tpu.contract_precision<fp32>} : vector<32x128xf32>, vector<128x128xf32>, vector<32x128xf32> -> vector<32x128xf32>
    %26 = vector.extract_strided_slice %24 {offsets = [0, 0], sizes = [16, 128], strides = [1, 1]} : vector<32x128xf32> to vector<16x128xf32>
    %27 = vector.extract_strided_slice %25 {offsets = [16, 0], sizes = [16, 128], strides = [1, 1]} : vector<32x128xf32> to vector<16x128xf32>
    %28 = arith.subf %26, %27 : vector<16x128xf32>
    %29 = vector.extract_strided_slice %25 {offsets = [0, 0], sizes = [16, 128], strides = [1, 1]} : vector<32x128xf32> to vector<16x128xf32>
    %30 = vector.extract_strided_slice %24 {offsets = [16, 0], sizes = [16, 128], strides = [1, 1]} : vector<32x128xf32> to vector<16x128xf32>
    %31 = arith.addf %29, %30 : vector<16x128xf32>
    %32 = arith.mulf %28, %28 : vector<16x128xf32>
    %33 = arith.mulf %31, %31 : vector<16x128xf32>
    %34 = arith.addf %32, %33 : vector<16x128xf32>
    %35 = math.sqrt %34 : vector<16x128xf32>
    %c0_17 = arith.constant 0 : index
    %c0_18 = arith.constant 0 : index
    %36 = vector.load %arg8[%c0_17, %c0_18] : memref<16x128xf32, #tpu.memory_space<vmem>>, vector<16x128xf32>
    %37 = arith.subf %20, %35 : vector<16x128xf32>
    %38 = math.absf %37 : vector<16x128xf32>
    %39 = arith.addf %36, %38 : vector<16x128xf32>
    %c0_19 = arith.constant 0 : index
    %c0_20 = arith.constant 0 : index
    %40 = vector.load %arg8[%c0_19, %c0_20] : memref<16x128xf32, #tpu.memory_space<vmem>>, vector<16x128xf32>
    tpu.vector_store %arg8[%c0_19, %c0_20], %39 {strides = array<i32>} : memref<16x128xf32, #tpu.memory_space<vmem>>, vector<16x128xf32>,
    %c0_i32_21 = arith.constant 0 : i32
    %41 = arith.cmpi eq, %arg1, %c0_i32_21 : i32
    %42 = arith.extui %41 : i1 to i32
    %c0_i32_22 = arith.constant 0 : i32
    %43 = arith.cmpi ne, %42, %c0_i32_22 : i32
    scf.if %43 {
      %cst_23 = arith.constant 0.000000e+00 : f32
      %44 = vector.broadcast %cst_23 : f32 to vector<1x8x128xf32>
      %c0_24 = arith.constant 0 : index
      %c0_25 = arith.constant 0 : index
      %45 = vector.load %arg8[%c0_24, %c0_25] : memref<16x128xf32, #tpu.memory_space<vmem>>, vector<16x128xf32>
      %46 = vector.shape_cast %45 : vector<16x128xf32> to vector<1x16x128xf32>
      %cst_26 = arith.constant dense<0.000000e+00> : vector<1xf32>
      %47 = vector.multi_reduction <add>, %46, %cst_26 [1, 2] : vector<1x16x128xf32> to vector<1xf32>
      %48 = vector.shape_cast %47 : vector<1xf32> to vector<1x1x1xf32>
      %49 = vector.extract %48[0, 0, 0] : f32 from vector<1x1x1xf32>
      %50 = vector.broadcast %49 : f32 to vector<1x8x128xf32>
      %51 = arith.addf %44, %50 : vector<1x8x128xf32>
      %c0_27 = arith.constant 0 : index
      %c0_28 = arith.constant 0 : index
      %c0_29 = arith.constant 0 : index
      %52 = vector.load %arg7[%c0_27, %c0_28, %c0_29] : memref<1x8x128xf32, #tpu.memory_space<vmem>>, vector<1x8x128xf32>
      tpu.vector_store %arg7[%c0_27, %c0_28, %c0_29], %51 {strides = array<i32>} : memref<1x8x128xf32, #tpu.memory_space<vmem>>, vector<1x8x128xf32>,
    } else {
    }
    return
  }
  func.func @transform_0(%arg0: i32, %arg1: i32) -> (i32, i32) {
    %c0_i32 = arith.constant 0 : i32
    %c0_i32_0 = arith.constant 0 : i32
    %c0_i32_1 = arith.constant 0 : i32
    return %c0_i32, %c0_i32_0 : i32, i32
  }
  func.func @transform_1(%arg0: i32, %arg1: i32) -> (i32, i32) {
    %c0_i32 = arith.constant 0 : i32
    %c0_i32_0 = arith.constant 0 : i32
    %c0_i32_1 = arith.constant 0 : i32
    return %c0_i32, %c0_i32_0 : i32, i32
  }
  func.func @transform_2(%arg0: i32, %arg1: i32) -> (i32, i32) {
    %c0_i32 = arith.constant 0 : i32
    %c0_i32_0 = arith.constant 0 : i32
    %c0_i32_1 = arith.constant 0 : i32
    return %c0_i32, %c0_i32_0 : i32, i32
  }
  func.func @transform_3(%arg0: i32, %arg1: i32) -> (i32, i32, i32) {
    %c1_i32 = arith.constant 1 : i32
    %0 = arith.muli %arg0, %c1_i32 : i32
    %1 = arith.addi %0, %arg1 : i32
    %c0_i32 = arith.constant 0 : i32
    %c0_i32_0 = arith.constant 0 : i32
    %c0_i32_1 = arith.constant 0 : i32
    return %1, %c0_i32, %c0_i32_0 : i32, i32, i32
  }
  func.func @transform_4(%arg0: i32, %arg1: i32) -> (i32, i32, i32) {
    %c1_i32 = arith.constant 1 : i32
    %0 = arith.muli %arg0, %c1_i32 : i32
    %1 = arith.addi %0, %arg1 : i32
    %c0_i32 = arith.constant 0 : i32
    %c0_i32_0 = arith.constant 0 : i32
    %c0_i32_1 = arith.constant 0 : i32
    return %1, %c0_i32, %c0_i32_0 : i32, i32, i32
  }
  func.func @transform_5(%arg0: i32, %arg1: i32) -> (i32, i32, i32) {
    %c0_i32 = arith.constant 0 : i32
    %c0_i32_0 = arith.constant 0 : i32
    %c0_i32_1 = arith.constant 0 : i32
    return %arg0, %c0_i32, %c0_i32_0 : i32, i32, i32
  }
}

</mosaic_0001>

<bundles_post_ra>
// kernel: tpu_custom_call.1
= control target key start
LH: loop header
LB: loop body
LE: loop exit
PB: predicated region body
PF: predicated region fallthrough
CT: control target
= control target key end

     0   :  { %10 = vsyncpa [#allocation4], 0  ;;  %s8331_s0 = inlined_call_operand.vmem [shape: f32[32,16], index: 0, kind: input, shape index: {}]   ;;  %s8332_s1 = inlined_call_operand.hbm [shape: f32[128,128], index: 1, kind: input, shape index: {}]   ;;  %s8333_s2 = inlined_call_operand.hbm [shape: f32[128,128], index: 2, kind: input, shape index: {}]   ;;  %s8334_s3 = inlined_call_operand.vmem [shape: f32[1,16,128], index: 3, kind: input, shape index: {}]   ;;  %s8335_s4 = inlined_call_operand.vmem [shape: f32[1,16,128], index: 4, kind: input, shape index: {}]   ;;  %s8336_s5 = inlined_call_operand.hbm [shape: f32[1,8,128], index: 5, kind: output, shape index: {}]  }
   0x1   :  { %11 = vsyncpa [#allocation7], 0 }
   0x2   :  { %12 = vsyncpa [#allocation5], 0  ;;  %s7119_s18 = smov [#allocation3]   ;;  %s7047_s22 = scalar_lea.hbm %s8332_s1, 2048 }
   0x3   :  { %s20_s19 = sshll.u32 %s7119_s18, 4  ;;  %p7048_p0 = scmp.ne.s32.totalorder %s8332_s1, %s7047_s22  ;;  %s21_s19 = int_to_ptr.vmem [resolvable:$true] %s20_s19 }
   0x4   :  { %p7051_p1 = scmp.lt.u32.totalorder %s7047_s22, %s8332_s1 }
   0x6   :  { %p7053_p2 = pnand %p7051_p1, %p7048_p0 }
   0x8   :  { %7056 = shalt.err (!%p7053_p2)
}
   0x9   :  { %s7057_s27 = scalar_lea.vmem %s21_s19, 2048  ;;  %p7062_p4 = scmp.lt.s32.totalorder %s21_s19, %s21_s19 }
   0xa   :  { %p7058_p3 = scmp.ne.s32.totalorder %s21_s19, %s7057_s27  ;;  %p7063_p5 = scmp.lt.s32.totalorder %s7057_s27, %s7057_s27 }
   0xc   :  { %p7064_p6 = por %p7063_p5, %p7062_p4 }
   0xe   :  { %p7065_p7 = pnand %p7064_p6, %p7058_p3 }
  0x10   :  { %7068 = shalt.err (!%p7065_p7)
}
  0x11   :  { %s7120_s28 = smov 128   ;;  %s7121_s29 = smov 8  }
  0x12   :  { %26 = dma.hbm_to_vmem [thread:$0]  %s8332_s1, 2048, %s21_s19, [#allocation4], %s7120_s28, %s7120_s28, %s7121_s29  }
  0x13   :  { %s7122_s7 = smov [#allocation6]   ;;  %s7069_s11 = scalar_lea.hbm %s8333_s2, 2048 }
  0x14   :  { %s32_s8 = sshll.u32 %s7122_s7, 4  ;;  %p7070_p8 = scmp.ne.s32.totalorder %s8333_s2, %s7069_s11  ;;  %s33_s8 = int_to_ptr.vmem [resolvable:$true] %s32_s8 }
  0x15   :  { %p7073_p9 = scmp.lt.u32.totalorder %s7069_s11, %s8333_s2 }
  0x17   :  { %p7075_p10 = pnand %p7073_p9, %p7070_p8 }
  0x19   :  { %7078 = shalt.err (!%p7075_p10)
}
  0x1a   :  { %s7079_s16 = scalar_lea.vmem %s33_s8, 2048  ;;  %p7084_p12 = scmp.lt.s32.totalorder %s33_s8, %s33_s8 }
  0x1b   :  { %p7080_p11 = scmp.ne.s32.totalorder %s33_s8, %s7079_s16  ;;  %p7085_p13 = scmp.lt.s32.totalorder %s7079_s16, %s7079_s16 }
  0x1d   :  { %p7086_p0 = por %p7085_p13, %p7084_p12 }
  0x1f   :  { %p7087_p1 = pnand %p7086_p0, %p7080_p11 }
  0x21   :  { %7090 = shalt.err (!%p7087_p1)
}
  0x22   :  { %38 = dma.hbm_to_vmem [thread:$0]  %s8333_s2, 2048, %s33_s8, [#allocation7], %s7120_s28, %s7120_s28, %s7121_s29  }
  0x23   :  { %7113 = dma.done.wait [#allocation4], 2048  }
  0x24   :  { %7114 = vsyncadd [#allocation4], 4294965248 }
  0x25   :  { %7115 = dma.done.wait [#allocation7], 2048  }
  0x26   :  { %7116 = vsyncadd [#allocation7], 4294965248  ;;  %vm133_vm0 = vcmask 130048   ;;  %v131_v0 = vld [vmem:[%s8334_s3] sm:$0xff]  ;;  %v132_v1 = vld [vmem:[%s8334_s3 + $0x8] sm:$0xff] }
  0x27   :  { %v95_v2 = vld [vmem:[%s8331_s0] sm:$0xff]  ;;  %v147_v3 = vand.u32 4294901760, %v131_v0  ;;  %v150_v4 = vand.u32 4294901760, %v132_v1  ;;  %v96_v6 = vld [vmem:[%s8331_s0 + $0x8] sm:$0xff]  ;;  %v97_v7 = vld [vmem:[%s8331_s0 + $0x10] sm:$0xff] }
  0x28   :  { %v135_v5 = vsel %vm133_vm0, %v95_v2, 0  ;;  %v98_v8 = vld [vmem:[%s8331_s0 + $0x18] sm:$0xff]  ;;  %v138_v10 = vsel %vm133_vm0, %v96_v6, 0  ;;  %v141_v11 = vsel %vm133_vm0, %v97_v7, 0  ;;  %v7235_v33 = vld [vmem:[#allocation3] sm:$0xff]  ;;  %v2299_v42 = vld [vmem:[%s8335_s4 + $0x8] sm:$0xff] }
  0x29   :  { %v7196_v9 = vand.u32 4294901760, %v135_v5  ;;  %v144_v12 = vsel %vm133_vm0, %v98_v8, 0  ;;  %v7198_v13 = vpack.c.bf16 %v150_v4, %v147_v3  ;;  %v255_v14 = vsub.f32 %v131_v0, %v147_v3  ;;  %v2298_v41 = vld [vmem:[%s8335_s4] sm:$0xff]  ;;  %v7252_v43 = vld [vmem:[#allocation3 + $0x8] sm:$0xff]  ;;  %v7265_v52 = vld [vmem:[#allocation3 + $0x10] sm:$0xff]  ;;  %s7123_s4 = smov [#allocation8]  }
  0x2a   :  { %v262_v15 = vsub.f32 %v132_v1, %v150_v4  ;;  %v7200_v16 = vand.u32 4294901760, %v138_v10  ;;  %v7205_v18 = vand.u32 4294901760, %v141_v11  ;;  %v7207_v19 = vand.u32 4294901760, %v144_v12  ;;  %v7267_v53 = vld [vmem:[#allocation3 + $0x18] sm:$0xff]  ;;  %v7283_v59 = vld [vmem:[#allocation3 + $0x20] sm:$0xff]  ;;  %v7285_v60 = vld [vmem:[#allocation3 + $0x28] sm:$0xff] }
  0x2b   :  { %v7203_v17 = vsub.f32 %v135_v5, %v7196_v9  ;;  %6093 = vmatprep.subr.bf16.mxu1 %v7198_v13  ;;  %v256_v22 = vand.u32 4294901760, %v255_v14  ;;  %v735_v46 = vand.u32 4294901760, %v7235_v33  ;;  %v2301_v48 = vand.u32 4294901760, %v2298_v41  ;;  %s4486_s6 = sshll.u32 %s7123_s4, 4  ;;  %s4487_s6 = int_to_ptr.vmem [resolvable:$true] %s4486_s6 }
  0x2c   :  { %v6100_v20 = vpack.c.bf16 %v262_v15, %v255_v14  ;;  %v7210_v21 = vsub.f32 %v138_v10, %v7200_v16  ;;  %v263_v23 = vand.u32 4294901760, %v262_v15  ;;  %v7215_v24 = vsub.f32 %v141_v11, %v7205_v18  ;;  %6095 = vmatpush3.bf16.msra.mxu1 %v7198_v13  ;;  %s7091_s8 = scalar_lea.vmem %s4487_s6, 128  ;;  %p7096_p3 = scmp.lt.s32.totalorder %s4487_s6, %s4487_s6 }
  0x2d   :  { %5084 = vmatprep.mubr.f32.mxu0 %v7203_v17  ;;  %v7218_v25 = vsub.f32 %v144_v12, %v7207_v19  ;;  %v7222_v26 = vand.u32 4294901760, %v7203_v17  ;;  %v257_v28 = vsub.f32 %v255_v14, %v256_v22  ;;  %v2304_v49 = vand.u32 4294901760, %v2299_v42  ;;  %v105_v12 = vld [vmem:[#allocation3 + $0x30] sm:$0xff]  ;;  %p7092_p2 = scmp.ne.s32.totalorder %s4487_s6, %s7091_s8  ;;  %p7097_p4 = scmp.lt.s32.totalorder %s7091_s8, %s7091_s8 }
  0x2e   :  { %6101 = vmatprep.subr.bf16.mxu0 %v6100_v20  ;;  %v7225_v27 = vand.u32 4294901760, %v7210_v21  ;;  %v264_v29 = vsub.f32 %v262_v15, %v263_v23  ;;  %v7230_v31 = vand.u32 4294901760, %v7215_v24  ;;  %v6108_v35 = vpack.c.bf16 %v263_v23, %v256_v22  ;;  %v7363_v22 = vld [vmem:[#allocation3 + $0x58] sm:$0xff] }
  0x2f   :  { %6103 = vmatpush3.bf16.msra.mxu0 %v6100_v20  ;;  %v216_v30 = vsub.f32 %v7203_v17, %v7222_v26  ;;  %v7233_v32 = vand.u32 4294901760, %v7218_v25  ;;  %v258_v36 = vand.u32 4294901760, %v257_v28  ;;  %v738_v50 = vand.u32 4294901760, %v7252_v43  ;;  %v7346_v20 = vld [vmem:[#allocation3 + $0x40] sm:$0xff]  ;;  %p7098_p5 = por %p7097_p4, %p7096_p3 }
  0x30   :  { %6105 = vmatprep.subr.bf16.mxu0 %v7198_v13  ;;  %v226_v34 = vsub.f32 %v7210_v21, %v7225_v27  ;;  %v265_v37 = vand.u32 4294901760, %v264_v29  ;;  %v236_v39 = vsub.f32 %v7215_v24, %v7230_v31  ;;  %v2409_v55 = vsub.f32 %v2298_v41, %v2301_v48 }
  0x31   :  { %v7240_v38 = vand.u32 4294901760, %v216_v30  ;;  %v246_v40 = vsub.f32 %v7218_v25, %v7233_v32  ;;  %v7275_v54 = vpack.c.bf16 %v738_v50, %v735_v46  ;;  %v2416_v56 = vsub.f32 %v2299_v42, %v2304_v49  ;;  %p7099_p6 = pnand %p7098_p5, %p7092_p2 }
  0x32   :  { %5085 = vmatmul.mubr.f32.vlgmr.msra.gmra.mrb[0].mxu0 %v7210_v21  ;;  %v7255_v44 = vand.u32 4294901760, %v226_v34  ;;  %v6096_v45 = vpack.c.bf16 %v265_v37, %v258_v36  ;;  %v7260_v47 = vand.u32 4294901760, %v236_v39  ;;  %v741_v57 = vand.u32 4294901760, %v7265_v52  ;;  %v7398_v34 = vld [vmem:[#allocation3 + $0x70] sm:$0xff] }
  0x33   :  { %6107 = vmatpush3.bf16.msra.mxu0 %v7198_v13  ;;  %5087 = vmatprep.mubr.f32.mxu0 %v7215_v24  ;;  %v247_v51 = vand.u32 4294901760, %v246_v40  ;;  %8383 = vst [vmem:[#allocation12_spill] sm:$0xff] %v7275_v54  ;;  %v744_v58 = vand.u32 4294901760, %v7267_v53  ;;  %v2410_v61 = vand.u32 4294901760, %v2409_v55  ;;  %v2417_v62 = vand.u32 4294901760, %v2416_v56 }
  0x34   :  { %5064 = vmatprep.mubr.f32.mxu1 %v7240_v38  ;;  %6109 = vmatprep.subr.bf16.mxu0 %v6108_v35  ;;  %v747_v0 = vand.u32 4294901760, %v7283_v59  ;;  %v750_v1 = vand.u32 4294901760, %v7285_v60  ;;  %v6500_v2 = vpack.c.bf16 %v2304_v49, %v2301_v48  ;;  %v6508_v10 = vpack.c.bf16 %v2416_v56, %v2409_v55 }
  0x35   :  { %5065 = vmatmul.mubr.f32.vlgmr.msra.gmra.mrb[0].mxu1 %v7255_v44  ;;  %6097 = vmatprep.subr.bf16.mxu1 %v6096_v45  ;;  %v7293_v63 = vpack.c.bf16 %v744_v58, %v741_v57  ;;  %v2411_v3 = vsub.f32 %v2409_v55, %v2410_v61  ;;  %v2418_v4 = vsub.f32 %v2416_v56, %v2417_v62  ;;  %v753_v14 = vand.u32 4294901760, %v105_v12 }
  0x36   :  { %5088 = vmatmul.mubr.f32.gmra.mrb[2].mxu0 %v7218_v25  ;;  %5067 = vmatprep.mubr.f32.mxu1 %v7260_v47  ;;  %v7308_v5 = vpack.c.bf16 %v750_v1, %v747_v0  ;;  %v6516_v11 = vpack.c.bf16 %v2417_v62, %v2410_v61  ;;  %v777_v36 = vand.u32 4294901760, %v7398_v34  ;;  %v7423_v42 = vsub.f32 %v7265_v52, %v741_v57 }
  0x37   :  { %5094 = vmatprep.mubr.f32.mxu0 %v7222_v26  ;;  %6099 = vmatpush3.bf16.msra.mxu1 %v6096_v45  ;;  %8384 = vst [vmem:[#allocation13_spill] sm:$0xff] %v7293_v63  ;;  %v2412_v6 = vand.u32 4294901760, %v2411_v3  ;;  %v2419_v7 = vand.u32 4294901760, %v2418_v4  ;;  %v7450_v52 = vsub.f32 %v7285_v60, %v750_v1  ;;  %v7465_v61 = vsub.f32 %v105_v12, %v753_v14 }
  0x38   :  { %6117 = vmatprep.subr.bf16.mxu1 %v7275_v54  ;;  %8385 = vst [vmem:[#allocation14_spill] sm:$0xff] %v7308_v5 }
  0x39   :  { %5068 = vmatmul.mubr.f32.gmra.mrb[2].mxu1 %v247_v51  ;;  %v6504_v8 = vpack.c.bf16 %v2419_v7, %v2412_v6  ;;  %v8347_v57 = vand.u32 4294901760, %v7450_v52 }
  0x3a   :  { %5095 = vmatmul.mubr.f32.vlgmr.msra.gmra.mrb[0].mxu0 %v7225_v27  ;;  %5074 = vmatprep.mubr.f32.mxu1 %v7196_v9 }
  0x3b   :  { %6111 = vmatpush3.bf16.msra.mxu0 %v6108_v35  ;;  %5097 = vmatprep.mubr.f32.mxu0 %v7230_v31  ;;  %v7400_v35 = vld [vmem:[#allocation3 + $0x78] sm:$0xff]  ;;  %v894_v60 = vsub.f32 %v7450_v52, %v8347_v57 }
  0x3c   :  { %6113 = vmatprep.subr.bf16.mxu0 %v7198_v13  ;;  %v780_v37 = vand.u32 4294901760, %v7400_v35 }
  0x3d   :  { %5075 = vmatmul.mubr.f32.vlgmr.msra.gmra.mrb[0].mxu1 %v7200_v16  ;;  %v895_v1 = vand.u32 4294901760, %v894_v60 }
  0x3e   :  { %5098 = vmatmul.mubr.f32.gmra.mrb[2].mxu0 %v7233_v32  ;;  %5077 = vmatprep.mubr.f32.mxu1 %v7205_v18  ;;  %v7412_v39 = vpack.c.bf16 %v780_v37, %v777_v36 }
  0x3f   :  { %5104 = vmatprep.mubr.f32.mxu0 %v7196_v9  ;;  %6119 = vmatpush3.bf16.msra.mxu1 %v7275_v54 }
  0x40   :  { %6121 = vmatprep.subr.bf16.mxu1 %v7293_v63  ;;  %8390 = vst [vmem:[#allocation19_spill] sm:$0xff] %v7412_v39 }
  0x41   :  { %5078 = vmatmul.mubr.f32.gmra.mrb[2].mxu1 %v7207_v19 }
  0x42   :  { %5105 = vmatmul.mubr.f32.vlgmr.msra.gmra.mrb[0].mxu0 %v7200_v16 }
  0x43   :  { %6115 = vmatpush3.bf16.msra.mxu0 %v7198_v13  ;;  %5107 = vmatprep.mubr.f32.mxu0 %v7205_v18  ;;  %v106_v13 = vld [vmem:[#allocation3 + $0x38] sm:$0xff] }
  0x44   :  { %6501 = vmatprep.subr.bf16.mxu0 %v6500_v2  ;;  %6123 = vmatpush3.bf16.msra.mxu1 %v7293_v63  ;;  %v756_v15 = vand.u32 4294901760, %v106_v13 }
  0x45   :  { %6125 = vmatprep.subr.bf16.mxu1 %v7308_v5 }
  0x46   :  { %5108 = vmatmul.mubr.f32.gmra.mrb[2].mxu0 %v7207_v19  ;;  %v7467_v62 = vsub.f32 %v106_v13, %v756_v15 }
  0x47   :  { %5114 = vmatprep.mubr.f32.mxu0 %v7196_v9 }
  0x48   :  { %6127 = vmatpush3.bf16.msra.mxu1 %v7308_v5  ;;  %v8345_v3 = vand.u32 4294901760, %v7467_v62 }
  0x4a   :  { %5115 = vmatmul.mubr.f32.vlgmr.msra.gmra.mrb[0].mxu0 %v7200_v16 }
  0x4b   :  { %5117 = vmatprep.mubr.f32.mxu0 %v7205_v18  ;;  %6503 = vmatpush3.bf16.msra.mxu0 %v6500_v2 }
  0x4c   :  { %6505 = vmatprep.subr.bf16.mxu0 %v6504_v8 }
  0x4e   :  { %5118 = vmatmul.mubr.f32.gmra.mrb[2].mxu0 %v7207_v19 }
  0x4f   :  { %5580 = vmatprep.mubr.f32.mxu0 %v7240_v38 }
  0x52   :  { %5581 = vmatmul.mubr.f32.vlgmr.msra.gmra.mrb[4].mxu0 %v7255_v44 }
  0x53   :  { %5583 = vmatprep.mubr.f32.mxu0 %v7260_v47  ;;  %6507 = vmatpush3.bf16.msra.mxu0 %v6504_v8 }
  0x54   :  { %6509 = vmatprep.subr.bf16.mxu0 %v6508_v10 }
  0x56   :  { %5584 = vmatmul.mubr.f32.gmra.mrb[6].mxu0 %v247_v51  ;;  %v7445_v51 = vsub.f32 %v7283_v59, %v747_v0 }
  0x57   :  { %5590 = vmatprep.mubr.f32.mxu0 %v7196_v9 }
  0x58   :  { %v886_v56 = vand.u32 4294901760, %v7445_v51 }
  0x5a   :  { %5591 = vmatmul.mubr.f32.vlgmr.msra.gmra.mrb[4].mxu0 %v7200_v16  ;;  %v887_v59 = vsub.f32 %v7445_v51, %v886_v56 }
  0x5b   :  { %5593 = vmatprep.mubr.f32.mxu0 %v7205_v18  ;;  %6511 = vmatpush3.bf16.msra.mxu0 %v6508_v10  ;;  %v908_v10 = vsub.f32 %v7467_v62, %v8345_v3 }
  0x5c   :  { %6513 = vmatprep.subr.bf16.mxu0 %v6500_v2  ;;  %v888_v0 = vand.u32 4294901760, %v887_v59 }
  0x5e   :  { %5594 = vmatmul.mubr.f32.gmra.mrb[6].mxu0 %v7207_v19  ;;  %v7473_v4 = vpack.c.bf16 %v895_v1, %v888_v0 }
  0x5f   :  { %5600 = vmatprep.mubr.f32.mxu0 %v7203_v17  ;;  %v7344_v17 = vpack.c.bf16 %v756_v15, %v753_v14  ;;  %v909_v14 = vand.u32 4294901760, %v908_v10 }
  0x61   :  { %8386 = vst [vmem:[#allocation15_spill] sm:$0xff] %v7344_v17  ;;  %6129 = vmatprep.subr.bf16.mxu1 %v7344_v17 }
  0x62   :  { %5601 = vmatmul.mubr.f32.vlgmr.msra.gmra.mrb[4].mxu0 %v7210_v21  ;;  %v7348_v21 = vld [vmem:[#allocation3 + $0x48] sm:$0xff]  ;;  %6131 = vmatpush3.bf16.msra.mxu1 %v7344_v17 }
  0x63   :  { %5603 = vmatprep.mubr.f32.mxu0 %v7215_v24  ;;  %6515 = vmatpush3.bf16.msra.mxu0 %v6500_v2  ;;  %v768_v24 = vand.u32 4294901760, %v7363_v22 }
  0x64   :  { %6517 = vmatprep.subr.bf16.mxu0 %v6516_v11 }
  0x66   :  { %5604 = vmatmul.mubr.f32.gmra.mrb[6].mxu0 %v7218_v25 }
  0x67   :  { %5610 = vmatprep.mubr.f32.mxu0 %v7222_v26  ;;  %v7374_v26 = vld [vmem:[#allocation3 + $0x60] sm:$0xff] }
  0x68   :  { %v771_v28 = vand.u32 4294901760, %v7374_v26 }
  0x6a   :  { %5611 = vmatmul.mubr.f32.vlgmr.msra.gmra.mrb[4].mxu0 %v7225_v27  ;;  %v7376_v27 = vld [vmem:[#allocation3 + $0x68] sm:$0xff] }
  0x6b   :  { %5613 = vmatprep.mubr.f32.mxu0 %v7230_v31  ;;  %6519 = vmatpush3.bf16.msra.mxu0 %v6516_v11  ;;  %v774_v29 = vand.u32 4294901760, %v7376_v27  ;;  %v7391_v31 = vsub.f32 %v7235_v33, %v735_v46  ;;  %v872_v46 = vand.u32 4294901760, %v7423_v42 }
  0x6c   :  { %6521 = vmatprep.subr.bf16.mxu0 %v6500_v2 }
  0x6d   :  { %v7386_v30 = vpack.c.bf16 %v774_v29, %v771_v28  ;;  %v858_v38 = vand.u32 4294901760, %v7391_v31  ;;  %v873_v49 = vsub.f32 %v7423_v42, %v872_v46 }
  0x6e   :  { %5614 = vmatmul.mubr.f32.gmra.mrb[6].mxu0 %v7233_v32  ;;  %v7396_v32 = vsub.f32 %v7252_v43, %v738_v50  ;;  %v7428_v43 = vsub.f32 %v7267_v53, %v744_v58 }
  0x6f   :  { %5620 = vmatprep.mubr.f32.mxu0 %v7196_v9  ;;  %8389 = vst [vmem:[#allocation18_spill] sm:$0xff] %v7386_v30  ;;  %v859_v40 = vsub.f32 %v7391_v31, %v858_v38  ;;  %v874_v53 = vand.u32 4294901760, %v873_v49 }
  0x70   :  { %v865_v33 = vand.u32 4294901760, %v7396_v32  ;;  %v879_v47 = vand.u32 4294901760, %v7428_v43 }
  0x71   :  { %v860_v44 = vand.u32 4294901760, %v859_v40 }
  0x72   :  { %5621 = vmatmul.mubr.f32.vlgmr.msra.gmra.mrb[4].mxu0 %v7200_v16  ;;  %v866_v41 = vsub.f32 %v7396_v32, %v865_v33  ;;  %v880_v50 = vsub.f32 %v7428_v43, %v879_v47 }
  0x73   :  { %5623 = vmatprep.mubr.f32.mxu0 %v7205_v18  ;;  %6523 = vmatpush3.bf16.msra.mxu0 %v6500_v2  ;;  %v8346_v2 = vand.u32 4294901760, %v7465_v61 }
  0x74   :  { %v867_v45 = vand.u32 4294901760, %v866_v41  ;;  %v881_v55 = vand.u32 4294901760, %v880_v50 }
  0x75   :  { %v901_v6 = vsub.f32 %v7465_v61, %v8346_v2 }
  0x76   :  { %5624 = vmatmul.mubr.f32.gmra.mrb[6].mxu0 %v7207_v19  ;;  %v7434_v48 = vpack.c.bf16 %v867_v45, %v860_v44  ;;  %v7457_v58 = vpack.c.bf16 %v881_v55, %v874_v53 }
  0x77   :  { %5630 = vmatprep.mubr.f32.mxu0 %v7196_v9  ;;  %v759_v9 = vand.u32 4294901760, %v7346_v20  ;;  %v902_v11 = vand.u32 4294901760, %v901_v6 }
  0x78   :  { %6557 = vmatprep.subr.bf16.mxu0 %v7434_v48 }
  0x79   :  { %v7481_v7 = vsub.f32 %v7346_v20, %v759_v9 }
  0x7a   :  { %5631 = vmatmul.mubr.f32.vlgmr.msra.gmra.mrb[4].mxu0 %v7200_v16  ;;  %v762_v16 = vand.u32 4294901760, %v7348_v21 }
  0x7b   :  { %5633 = vmatprep.mubr.f32.mxu0 %v7205_v18  ;;  %6559 = vmatpush3.bf16.msra.mxu0 %v7434_v48  ;;  %v8344_v12 = vand.u32 4294901760, %v7481_v7 }
  0x7c   :  { %v7358_v18 = vpack.c.bf16 %v762_v16, %v759_v9  ;;  %6561 = vmatprep.subr.bf16.mxu0 %v7457_v58  ;;  %v7486_v8 = vsub.f32 %v7348_v21, %v762_v16  ;;  %v7509_v9 = vsub.f32 %v7363_v22, %v768_v24  ;;  %v7511_v16 = vpack.c.bf16 %v909_v14, %v902_v11 }
  0x7d   :  { %v915_v15 = vsub.f32 %v7481_v7, %v8344_v12 }
  0x7e   :  { %5634 = vmatmul.mubr.f32.gmra.mrb[6].mxu0 %v7207_v19  ;;  %8387 = vst [vmem:[#allocation16_spill] sm:$0xff] %v7358_v18  ;;  %6133 = vmatprep.subr.bf16.mxu1 %v7358_v18  ;;  %v7361_v19 = vld [vmem:[#allocation3 + $0x50] sm:$0xff]  ;;  %v8343_v13 = vand.u32 4294901760, %v7486_v8  ;;  %v8341_v45 = vand.u32 4294901760, %v7509_v9 }
  0x7f   :  { %6135 = vmatpush3.bf16.msra.mxu1 %v7358_v18  ;;  %v765_v23 = vand.u32 4294901760, %v7361_v19  ;;  %6563 = vmatpush3.bf16.msra.mxu0 %v7457_v58  ;;  %v916_v40 = vand.u32 4294901760, %v915_v15  ;;  %v7576_v15 = vpack.c.bf16 %v7396_v32, %v7391_v31  ;;  %v8394_v31 = vand.u32 4294901760, %v7450_v52 }
  0x80   :  { %6565 = vmatprep.subr.bf16.mxu0 %v7473_v4  ;;  %v922_v20 = vsub.f32 %v7486_v8, %v8343_v13  ;;  %v936_v22 = vsub.f32 %v7509_v9, %v8341_v45 }
  0x81   :  { %v7372_v25 = vpack.c.bf16 %v768_v24, %v765_v23  ;;  %v7504_v21 = vsub.f32 %v7361_v19, %v765_v23  ;;  %v7528_v23 = vsub.f32 %v7374_v26, %v771_v28  ;;  %v7533_v24 = vsub.f32 %v7376_v27, %v774_v29 }
  0x82   :  { %v923_v41 = vand.u32 4294901760, %v922_v20  ;;  %v937_v53 = vand.u32 4294901760, %v936_v22  ;;  %v7547_v27 = vsub.f32 %v7398_v34, %v777_v36  ;;  %v7552_v28 = vsub.f32 %v7400_v35, %v780_v37 }
  0x83   :  { %8388 = vst [vmem:[#allocation17_spill] sm:$0xff] %v7372_v25  ;;  %6137 = vmatprep.subr.bf16.mxu1 %v7372_v25  ;;  %6567 = vmatpush3.bf16.msra.mxu0 %v7473_v4  ;;  %v8342_v44 = vand.u32 4294901760, %v7504_v21  ;;  %v8340_v55 = vand.u32 4294901760, %v7528_v23  ;;  %v8339_v59 = vand.u32 4294901760, %v7533_v24  ;;  %v7582_v20 = vpack.c.bf16 %v7428_v43, %v7423_v42 }
  0x84   :  { %6139 = vmatpush3.bf16.msra.mxu1 %v7372_v25  ;;  %6569 = vmatprep.subr.bf16.mxu0 %v7511_v16  ;;  %v7516_v49 = vpack.c.bf16 %v923_v41, %v916_v40  ;;  %v8338_v1 = vand.u32 4294901760, %v7547_v27  ;;  %v8337_v6 = vand.u32 4294901760, %v7552_v28  ;;  %v7586_v40 = vpack.c.bf16 %v7450_v52, %v7445_v51 }
  0x85   :  { %6141 = vmatprep.subr.bf16.mxu1 %v7386_v30  ;;  %v929_v19 = vsub.f32 %v7504_v21, %v8342_v44  ;;  %v943_v26 = vsub.f32 %v7528_v23, %v8340_v55  ;;  %v950_v29 = vsub.f32 %v7533_v24, %v8339_v59  ;;  %v7590_v41 = vpack.c.bf16 %v7467_v62, %v7465_v61 }
  0x86   :  { %v957_v34 = vsub.f32 %v7547_v27, %v8338_v1  ;;  %v964_v35 = vsub.f32 %v7552_v28, %v8337_v6  ;;  %v7598_v22 = vpack.c.bf16 %v7509_v9, %v7504_v21  ;;  %v6252_v32 = vpack.c.bf16 %v8394_v31, %v886_v56 }
  0x87   :  { %6571 = vmatpush3.bf16.msra.mxu0 %v7511_v16  ;;  %v930_v50 = vand.u32 4294901760, %v929_v19  ;;  %v944_v0 = vand.u32 4294901760, %v943_v26  ;;  %v951_v10 = vand.u32 4294901760, %v950_v29  ;;  %v7594_v19 = vpack.c.bf16 %v7486_v8, %v7481_v7 }
  0x88   :  { %6143 = vmatpush3.bf16.msra.mxu1 %v7386_v30  ;;  %6573 = vmatprep.subr.bf16.mxu0 %v7516_v49  ;;  %v958_v37 = vand.u32 4294901760, %v957_v34  ;;  %v965_v11 = vand.u32 4294901760, %v964_v35  ;;  %v8395_v42 = vand.u32 4294901760, %v7465_v61  ;;  %v8396_v43 = vand.u32 4294901760, %v7467_v62 }
  0x89   :  { %6145 = vmatprep.subr.bf16.mxu1 %v7412_v39  ;;  %v7538_v60 = vpack.c.bf16 %v937_v53, %v930_v50  ;;  %v7567_v36 = vpack.c.bf16 %v951_v10, %v944_v0  ;;  %v7602_v50 = vpack.c.bf16 %v7533_v24, %v7528_v23  ;;  %v7606_v53 = vpack.c.bf16 %v7552_v28, %v7547_v27 }
  0x8a   :  { %v7570_v14 = vpack.c.bf16 %v965_v11, %v958_v37  ;;  %v8397_v51 = vand.u32 4294901760, %v7481_v7  ;;  %v8398_v52 = vand.u32 4294901760, %v7486_v8  ;;  %v8399_v61 = vand.u32 4294901760, %v7504_v21 }
  0x8b   :  { %6575 = vmatpush3.bf16.msra.mxu0 %v7516_v49  ;;  %v8400_v62 = vand.u32 4294901760, %v7509_v9  ;;  %v8401_v7 = vand.u32 4294901760, %v7528_v23  ;;  %v8402_v8 = vand.u32 4294901760, %v7533_v24  ;;  %v8404_v21 = vand.u32 4294901760, %v7552_v28  ;;  %v115_v9 = vld [vmem:[#allocation6] sm:$0xff]  ;;  %v116_v23 = vld [vmem:[#allocation6 + $0x8] sm:$0xff] }
  0x8c   :  { %6147 = vmatpush3.bf16.msra.mxu1 %v7412_v39  ;;  %6577 = vmatprep.subr.bf16.mxu0 %v7538_v60  ;;  %v6260_v56 = vpack.c.bf16 %v8398_v52, %v8397_v51  ;;  %v1505_v24 = vand.u32 4294901760, %v115_v9  ;;  %v7858_v28 = vld [vmem:[#allocation6 + $0x10] sm:$0xff] }
  0x8d   :  { %6149 = vmatprep.subr.bf16.mxu1 %v7434_v48 }
  0x8f   :  { %6579 = vmatpush3.bf16.msra.mxu0 %v7538_v60 }
  0x90   :  { %6581 = vmatprep.subr.bf16.mxu0 %v7567_v36 }
  0x93   :  { %6583 = vmatpush3.bf16.msra.mxu0 %v7567_v36 }
  0x94   :  { %6585 = vmatprep.subr.bf16.mxu0 %v7570_v14 }
  0x97   :  { %6587 = vmatpush3.bf16.msra.mxu0 %v7570_v14 }
  0x98   :  { %6589 = vmatprep.subr.bf16.mxu0 %v7576_v15 }
 0x110   :  { %v5076_v26 = vpop.f32.mrb[0].mxu1 }
 0x111   :  { %v330_v29 = vpop.f32.mrb[1].mxu1 }
 0x114   :  { %v5079_v0 = vpop.f32.mrb[2].mxu1 }
 0x115   :  { %v342_v10 = vpop.f32.mrb[3].mxu1 }
 0x11d   :  { %v5116_v34 = vpop.f32.mrb[0].mxu0 }
 0x11e   :  { %v6908_v35 = vadd.f32 %v5116_v34, %v5076_v26  ;;  %v712_v37 = vpop.f32.mrb[1].mxu0 }
 0x11f   :  { %v6909_v11 = vadd.f32 %v712_v37, %v330_v29 }
 0x120   :  { %v7608_v6 = vand.u32 4294901760, %v6908_v35 }
 0x121   :  { %v7610_v1 = vand.u32 4294901760, %v6909_v11  ;;  %v5119_v59 = vpop.f32.mrb[2].mxu0 }
 0x122   :  { %v7613_v55 = vsub.f32 %v6908_v35, %v7608_v6  ;;  %v6910_v45 = vadd.f32 %v5119_v59, %v5079_v0  ;;  %v724_v44 = vpop.f32.mrb[3].mxu0 }
 0x123   :  { %v7616_v13 = vsub.f32 %v6909_v11, %v7610_v1  ;;  %v6911_v12 = vadd.f32 %v724_v44, %v342_v10 }
 0x124   :  { %v7619_v3 = vand.u32 4294901760, %v7613_v55  ;;  %v7621_v26 = vand.u32 4294901760, %v6910_v45 }
 0x125   :  { %v7623_v29 = vand.u32 4294901760, %v6911_v12  ;;  %v7626_v34 = vand.u32 4294901760, %v7616_v13 }
 0x126   :  { %8391 = vst [vmem:[#allocation20_spill] sm:$0xff] %v7619_v3  ;;  %v828_v35 = vsub.f32 %v7613_v55, %v7619_v3  ;;  %v7631_v59 = vsub.f32 %v6910_v45, %v7621_v26 }
 0x127   :  { %v7634_v0 = vsub.f32 %v6911_v12, %v7623_v29  ;;  %v818_v44 = vsub.f32 %v7616_v13, %v7626_v34 }
 0x128   :  { %v7639_v10 = vand.u32 4294901760, %v7631_v59  ;;  %v7646_v2 = vand.u32 4294901760, %v828_v35 }
 0x129   :  { %v7641_v37 = vand.u32 4294901760, %v818_v44  ;;  %v7644_v11 = vand.u32 4294901760, %v7634_v0 }
 0x12a   :  { %8392 = vst [vmem:[#allocation21_spill] sm:$0xff] %v7639_v10  ;;  %v848_v45 = vsub.f32 %v7631_v59, %v7639_v10 }
 0x12b   :  { %8393 = vst [vmem:[#allocation22_spill] sm:$0xff] %v7644_v11  ;;  %5152 = vmatprep.mubr.f32.mxu1 %v7641_v37  ;;  %v838_v12 = vsub.f32 %v7634_v0, %v7644_v11 }
 0x12c   :  { %5153 = vmatmul.mubr.f32.vlgmr.msra.gmra.mrb[4].mxu1 %v7646_v2  ;;  %v7658_v44 = vand.u32 4294901760, %v848_v45  ;;  %v8403_v45 = vand.u32 4294901760, %v7547_v27  ;;  %v1508_v27 = vand.u32 4294901760, %v116_v23 }
 0x12d   :  { %6151 = vmatpush3.bf16.msra.mxu1 %v7434_v48  ;;  %v7655_v57 = vand.u32 4294901760, %v838_v12 }
 0x12e   :  { %6153 = vmatprep.subr.bf16.mxu1 %v7457_v58  ;;  %v6272_v12 = vpack.c.bf16 %v8404_v21, %v8403_v45  ;;  %v7921_v45 = vld [vmem:[#allocation6 + $0x50] sm:$0xff]  ;;  %v7923_v21 = vld [vmem:[#allocation6 + $0x58] sm:$0xff] }
 0x12f   :  { %5155 = vmatprep.mubr.f32.mxu1 %v7655_v57 }
 0x130   :  { %5156 = vmatmul.mubr.f32.gmra.mrb[6].mxu1 %v7658_v44 }
 0x131   :  { %6155 = vmatpush3.bf16.msra.mxu1 %v7457_v58  ;;  %5190 = vmatprep.mubr.f32.mxu1 %v7610_v1 }
 0x132   :  { %6157 = vmatprep.subr.bf16.mxu1 %v7473_v4 }
 0x135   :  { %6159 = vmatpush3.bf16.msra.mxu1 %v7473_v4 }
 0x136   :  { %6161 = vmatprep.subr.bf16.mxu1 %v7511_v16 }
 0x139   :  { %6163 = vmatpush3.bf16.msra.mxu1 %v7511_v16 }
 0x13a   :  { %6165 = vmatprep.subr.bf16.mxu1 %v7516_v49 }
 0x13d   :  { %6167 = vmatpush3.bf16.msra.mxu1 %v7516_v49 }
 0x13e   :  { %6169 = vmatprep.subr.bf16.mxu1 %v7538_v60 }
 0x141   :  { %6171 = vmatpush3.bf16.msra.mxu1 %v7538_v60 }
 0x142   :  { %6173 = vmatprep.subr.bf16.mxu1 %v7567_v36 }
 0x145   :  { %6175 = vmatpush3.bf16.msra.mxu1 %v7567_v36 }
 0x146   :  { %6177 = vmatprep.subr.bf16.mxu1 %v7570_v14 }
 0x149   :  { %6179 = vmatpush3.bf16.msra.mxu1 %v7570_v14 }
 0x14a   :  { %6181 = vmatprep.subr.bf16.mxu1 %v7576_v15 }
 0x14c   :  { %5191 = vmatmul.mubr.f32.vlgmr.msra.gmra.mrb[4].mxu1 %v7608_v6 }
 0x14d   :  { %5193 = vmatprep.mubr.f32.mxu1 %v7623_v29  ;;  %6183 = vmatpush3.bf16.msra.mxu1 %v7576_v15  ;;  %v5632_v48 = vpop.f32.mrb[4].mxu0 }
 0x14e   :  { %v2866_v58 = vpop.f32.mrb[5].mxu0  ;;  %6185 = vmatprep.subr.bf16.mxu1 %v7582_v20  ;;  %v7684_v16 = vand.u32 4294901760, %v5632_v48 }
 0x14f   :  { %v7681_v4 = vand.u32 4294901760, %v2866_v58 }
 0x150   :  { %5194 = vmatmul.mubr.f32.gmra.mrb[6].mxu1 %v7621_v26 }
 0x151   :  { %6187 = vmatpush3.bf16.msra.mxu1 %v7582_v20  ;;  %5228 = vmatprep.mubr.f32.mxu1 %v7616_v13  ;;  %v5635_v49 = vpop.f32.mrb[6].mxu0  ;;  %v7699_v35 = vsub.f32 %v2866_v58, %v7681_v4  ;;  %v7866_v58 = vpack.c.bf16 %v1508_v27, %v1505_v24 }
 0x152   :  { %5706 = vmatprep.mubr.f32.mxu0 %v7681_v4  ;;  %v2878_v60 = vpop.f32.mrb[7].mxu0  ;;  %6189 = vmatprep.subr.bf16.mxu1 %v7586_v40  ;;  %v7694_v14 = vand.u32 4294901760, %v5635_v49 }
 0x153   :  { %v7690_v36 = vand.u32 4294901760, %v2878_v60  ;;  %5707 = vmatmul.mubr.f32.vlgmr.msra.gmra.mrb[8].mxu0 %v7684_v16 }
 0x154   :  { %6591 = vmatpush3.bf16.msra.mxu0 %v7576_v15  ;;  %v7734_v15 = vsub.f32 %v5632_v48, %v7684_v16  ;;  %v7860_v48 = vld [vmem:[#allocation6 + $0x18] sm:$0xff] }
 0x155   :  { %6191 = vmatpush3.bf16.msra.mxu1 %v7586_v40  ;;  %5709 = vmatprep.mubr.f32.mxu0 %v7690_v36 }
 0x156   :  { %6593 = vmatprep.subr.bf16.mxu0 %v7582_v20  ;;  %6193 = vmatprep.subr.bf16.mxu1 %v7590_v41 }
 0x157   :  { %5710 = vmatmul.mubr.f32.gmra.mrb[10].mxu0 %v7694_v14 }
 0x158   :  { %6595 = vmatpush3.bf16.msra.mxu0 %v7582_v20  ;;  %5744 = vmatprep.mubr.f32.mxu0 %v7699_v35  ;;  %v7739_v20 = vsub.f32 %v2878_v60, %v7690_v36  ;;  %v8350_v60 = vand.u32 4294901760, %v7860_v48 }
 0x159   :  { %6195 = vmatpush3.bf16.msra.mxu1 %v7590_v41  ;;  %6597 = vmatprep.subr.bf16.mxu0 %v7586_v40 }
 0x15a   :  { %6197 = vmatprep.subr.bf16.mxu1 %v7594_v19 }
 0x15c   :  { %6599 = vmatpush3.bf16.msra.mxu0 %v7586_v40  ;;  %v7747_v40 = vsub.f32 %v5635_v49, %v7694_v14  ;;  %v8351_v49 = vand.u32 4294901760, %v7858_v28 }
 0x15d   :  { %6199 = vmatpush3.bf16.msra.mxu1 %v7594_v19  ;;  %6601 = vmatprep.subr.bf16.mxu0 %v7590_v41 }
 0x15e   :  { %6201 = vmatprep.subr.bf16.mxu1 %v7598_v22  ;;  %v7882_v31 = vpack.c.bf16 %v8350_v60, %v8351_v49 }
 0x160   :  { %6603 = vmatpush3.bf16.msra.mxu0 %v7590_v41  ;;  %v7752_v41 = vand.u32 4294901760, %v7699_v35 }
 0x161   :  { %6203 = vmatpush3.bf16.msra.mxu1 %v7598_v22  ;;  %6605 = vmatprep.subr.bf16.mxu0 %v7594_v19 }
 0x162   :  { %6205 = vmatprep.subr.bf16.mxu1 %v7602_v50 }
 0x164   :  { %6607 = vmatpush3.bf16.msra.mxu0 %v7594_v19  ;;  %v6244_v19 = vpack.c.bf16 %v865_v33, %v858_v38  ;;  %v7795_v38 = vand.u32 4294901760, %v7734_v15  ;;  %v7799_v33 = vand.u32 4294901760, %v7739_v20 }
 0x165   :  { %6207 = vmatpush3.bf16.msra.mxu1 %v7602_v50  ;;  %6609 = vmatprep.subr.bf16.mxu0 %v7598_v22 }
 0x166   :  { %6209 = vmatprep.subr.bf16.mxu1 %v7606_v53 }
 0x168   :  { %6611 = vmatpush3.bf16.msra.mxu0 %v7598_v22  ;;  %v6248_v22 = vpack.c.bf16 %v879_v47, %v872_v46  ;;  %v6256_v46 = vpack.c.bf16 %v8396_v43, %v8395_v42  ;;  %v7808_v47 = vand.u32 4294901760, %v7747_v40  ;;  %v7886_v43 = vld [vmem:[#allocation6 + $0x30] sm:$0xff] }
 0x169   :  { %6211 = vmatpush3.bf16.msra.mxu1 %v7606_v53  ;;  %6613 = vmatprep.subr.bf16.mxu0 %v7602_v50  ;;  %v1523_v52 = vand.u32 4294901760, %v7886_v43 }
 0x16a   :  { %6213 = vmatprep.subr.bf16.mxu1 %v7275_v54 }
 0x16c   :  { %6615 = vmatpush3.bf16.msra.mxu0 %v7602_v50  ;;  %5229 = vmatmul.mubr.f32.vlgmr.msra.gmra.mrb[4].mxu1 %v7613_v55  ;;  %v6264_v50 = vpack.c.bf16 %v8400_v62, %v8399_v61  ;;  %v7904_v61 = vld [vmem:[#allocation6 + $0x40] sm:$0xff]  ;;  %v7906_v62 = vld [vmem:[#allocation6 + $0x48] sm:$0xff] }
 0x16d   :  { %5231 = vmatprep.mubr.f32.mxu1 %v7634_v0  ;;  %6215 = vmatpush3.bf16.msra.mxu1 %v7275_v54 }
 0x16e   :  { %6617 = vmatprep.subr.bf16.mxu0 %v7606_v53  ;;  %6217 = vmatprep.subr.bf16.mxu1 %v7293_v63 }
 0x170   :  { %6619 = vmatpush3.bf16.msra.mxu0 %v7606_v53  ;;  %5232 = vmatmul.mubr.f32.gmra.mrb[6].mxu1 %v7631_v59  ;;  %v6268_v53 = vpack.c.bf16 %v8402_v8, %v8401_v7  ;;  %v8357_v8 = vand.u32 4294901760, %v7904_v61 }
 0x171   :  { %6219 = vmatpush3.bf16.msra.mxu1 %v7293_v63  ;;  %5266 = vmatprep.mubr.f32.mxu1 %v7626_v34 }
 0x172   :  { %6621 = vmatprep.subr.bf16.mxu0 %v7275_v54  ;;  %6221 = vmatprep.subr.bf16.mxu1 %v7308_v5 }
 0x173   :  { %5745 = vmatmul.mubr.f32.vlgmr.msra.gmra.mrb[8].mxu0 %v7734_v15 }
 0x174   :  { %5747 = vmatprep.mubr.f32.mxu0 %v7739_v20  ;;  %6623 = vmatpush3.bf16.msra.mxu0 %v7275_v54 }
 0x175   :  { %6223 = vmatpush3.bf16.msra.mxu1 %v7308_v5  ;;  %6625 = vmatprep.subr.bf16.mxu0 %v7293_v63 }
 0x176   :  { %6225 = vmatprep.subr.bf16.mxu1 %v7344_v17 }
 0x177   :  { %5748 = vmatmul.mubr.f32.gmra.mrb[10].mxu0 %v7747_v40 }
 0x178   :  { %6627 = vmatpush3.bf16.msra.mxu0 %v7293_v63  ;;  %5782 = vmatprep.mubr.f32.mxu0 %v7752_v41 }
 0x179   :  { %6227 = vmatpush3.bf16.msra.mxu1 %v7344_v17  ;;  %6629 = vmatprep.subr.bf16.mxu0 %v7308_v5 }
 0x17a   :  { %6229 = vmatprep.subr.bf16.mxu1 %v7358_v18 }
 0x17c   :  { %6631 = vmatpush3.bf16.msra.mxu0 %v7308_v5 }
 0x17d   :  { %6231 = vmatpush3.bf16.msra.mxu1 %v7358_v18  ;;  %6633 = vmatprep.subr.bf16.mxu0 %v7344_v17 }
 0x17e   :  { %6233 = vmatprep.subr.bf16.mxu1 %v7372_v25 }
 0x180   :  { %6635 = vmatpush3.bf16.msra.mxu0 %v7344_v17 }
 0x181   :  { %6235 = vmatpush3.bf16.msra.mxu1 %v7372_v25  ;;  %6637 = vmatprep.subr.bf16.mxu0 %v7358_v18 }
 0x182   :  { %6237 = vmatprep.subr.bf16.mxu1 %v7386_v30 }
 0x184   :  { %6639 = vmatpush3.bf16.msra.mxu0 %v7358_v18 }
 0x185   :  { %6239 = vmatpush3.bf16.msra.mxu1 %v7386_v30  ;;  %6641 = vmatprep.subr.bf16.mxu0 %v7372_v25 }
 0x186   :  { %6241 = vmatprep.subr.bf16.mxu1 %v7412_v39 }
 0x188   :  { %6643 = vmatpush3.bf16.msra.mxu0 %v7372_v25 }
 0x189   :  { %6243 = vmatpush3.bf16.msra.mxu1 %v7412_v39  ;;  %6645 = vmatprep.subr.bf16.mxu0 %v7386_v30 }
 0x18a   :  { %6245 = vmatprep.subr.bf16.mxu1 %v6244_v19 }
 0x18c   :  { %6647 = vmatpush3.bf16.msra.mxu0 %v7386_v30  ;;  %5267 = vmatmul.mubr.f32.vlgmr.msra.gmra.mrb[4].mxu1 %v7619_v3 }
 0x18d   :  { %5269 = vmatprep.mubr.f32.mxu1 %v7644_v11  ;;  %6247 = vmatpush3.bf16.msra.mxu1 %v6244_v19 }
 0x18e   :  { %6649 = vmatprep.subr.bf16.mxu0 %v7412_v39  ;;  %6249 = vmatprep.subr.bf16.mxu1 %v6248_v22 }
 0x190   :  { %6651 = vmatpush3.bf16.msra.mxu0 %v7412_v39  ;;  %5270 = vmatmul.mubr.f32.gmra.mrb[6].mxu1 %v7639_v10  ;;  %v8425_v10 = vand.u32 4294901760, %v7923_v21 }
 0x191   :  { %6251 = vmatpush3.bf16.msra.mxu1 %v6248_v22  ;;  %5304 = vmatprep.mubr.f32.mxu1 %v7610_v1 }
 0x192   :  { %6653 = vmatprep.subr.bf16.mxu0 %v6244_v19  ;;  %6253 = vmatprep.subr.bf16.mxu1 %v6252_v32 }
 0x193   :  { %5783 = vmatmul.mubr.f32.vlgmr.msra.gmra.mrb[8].mxu0 %v7795_v38 }
 0x194   :  { %5785 = vmatprep.mubr.f32.mxu0 %v7799_v33  ;;  %6655 = vmatpush3.bf16.msra.mxu0 %v6244_v19  ;;  %v7870_v19 = vld [vmem:[#allocation6 + $0x20] sm:$0xff] }
 0x195   :  { %6255 = vmatpush3.bf16.msra.mxu1 %v6252_v32  ;;  %6657 = vmatprep.subr.bf16.mxu0 %v6248_v22 }
 0x196   :  { %6257 = vmatprep.subr.bf16.mxu1 %v6256_v46 }
 0x197   :  { %5786 = vmatmul.mubr.f32.gmra.mrb[10].mxu0 %v7808_v47 }
 0x198   :  { %6659 = vmatpush3.bf16.msra.mxu0 %v6248_v22  ;;  %5820 = vmatprep.mubr.f32.mxu0 %v7681_v4  ;;  %v7872_v22 = vld [vmem:[#allocation6 + $0x28] sm:$0xff] }
 0x199   :  { %6259 = vmatpush3.bf16.msra.mxu1 %v6256_v46  ;;  %6661 = vmatprep.subr.bf16.mxu0 %v6252_v32  ;;  %v8348_v42 = vand.u32 4294901760, %v7872_v22 }
 0x19a   :  { %6261 = vmatprep.subr.bf16.mxu1 %v6260_v56 }
 0x19c   :  { %6663 = vmatpush3.bf16.msra.mxu0 %v6252_v32  ;;  %v8349_v32 = vand.u32 4294901760, %v7870_v19 }
 0x19d   :  { %6263 = vmatpush3.bf16.msra.mxu1 %v6260_v56  ;;  %6665 = vmatprep.subr.bf16.mxu0 %v6256_v46 }
 0x19e   :  { %6265 = vmatprep.subr.bf16.mxu1 %v6264_v50  ;;  %v7900_v51 = vpack.c.bf16 %v8348_v42, %v8349_v32  ;;  %v7933_v42 = vsub.f32 %v115_v9, %v1505_v24  ;;  %v7935_v32 = vsub.f32 %v116_v23, %v1508_v27  ;;  %v8407_v23 = vand.u32 4294901760, %v7858_v28 }
 0x19f   :  { %v8408_v24 = vand.u32 4294901760, %v7860_v48 }
 0x1a0   :  { %6667 = vmatpush3.bf16.msra.mxu0 %v6256_v46  ;;  %v7888_v46 = vld [vmem:[#allocation6 + $0x38] sm:$0xff]  ;;  %v7971_v9 = vsub.f32 %v7858_v28, %v8407_v23  ;;  %v8414_v23 = vand.u32 4294901760, %v7872_v22 }
 0x1a1   :  { %6267 = vmatpush3.bf16.msra.mxu1 %v6264_v50  ;;  %6669 = vmatprep.subr.bf16.mxu0 %v6260_v56  ;;  %v7976_v27 = vsub.f32 %v7860_v48, %v8408_v24  ;;  %v8412_v24 = vand.u32 4294901760, %v7935_v32 }
 0x1a2   :  { %6269 = vmatprep.subr.bf16.mxu1 %v6268_v53 }
 0x1a4   :  { %6671 = vmatpush3.bf16.msra.mxu0 %v6260_v56  ;;  %v1526_v56 = vand.u32 4294901760, %v7888_v46 }
 0x1a5   :  { %6271 = vmatpush3.bf16.msra.mxu1 %v6268_v53  ;;  %6673 = vmatprep.subr.bf16.mxu0 %v6264_v50 }
 0x1a6   :  { %6273 = vmatprep.subr.bf16.mxu1 %v6272_v12  ;;  %v7916_v7 = vpack.c.bf16 %v1526_v56, %v1523_v52 }
 0x1a8   :  { %6675 = vmatpush3.bf16.msra.mxu0 %v6264_v50  ;;  %v2972_v50 = vsub.f32 %v7699_v35, %v7752_v41 }
 0x1a9   :  { %6275 = vmatpush3.bf16.msra.mxu1 %v6272_v12  ;;  %6677 = vmatprep.subr.bf16.mxu0 %v6268_v53 }
 0x1aa   :  { %6277 = vmatprep.subr.bf16.mxu1 %v7275_v54  ;;  %v7937_v60 = vand.u32 4294901760, %v2972_v50 }
 0x1ac   :  { %6679 = vmatpush3.bf16.msra.mxu0 %v6268_v53  ;;  %5305 = vmatmul.mubr.f32.vlgmr.msra.gmra.mrb[4].mxu1 %v7608_v6  ;;  %v8356_v53 = vand.u32 4294901760, %v7906_v62  ;;  %8405 = vst [vmem:[#allocation23_spill] sm:$0xff] %v7937_v60 }
 0x1ad   :  { %5307 = vmatprep.mubr.f32.mxu1 %v7623_v29  ;;  %6279 = vmatpush3.bf16.msra.mxu1 %v7275_v54 }
 0x1ae   :  { %6681 = vmatprep.subr.bf16.mxu0 %v6272_v12  ;;  %6281 = vmatprep.subr.bf16.mxu1 %v7293_v63  ;;  %v7944_v49 = vpack.c.bf16 %v8356_v53, %v8357_v8  ;;  %v7964_v53 = vld [vmem:[#allocation6 + $0x70] sm:$0xff]  ;;  %v7966_v8 = vld [vmem:[#allocation6 + $0x78] sm:$0xff] }
 0x1b0   :  { %6683 = vmatpush3.bf16.msra.mxu0 %v6272_v12  ;;  %5308 = vmatmul.mubr.f32.gmra.mrb[6].mxu1 %v7621_v26  ;;  %v7931_v12 = vld [vmem:[#allocation6 + $0x68] sm:$0xff] }
 0x1b1   :  { %6283 = vmatpush3.bf16.msra.mxu1 %v7293_v63  ;;  %5342 = vmatprep.mubr.f32.mxu1 %v7610_v1 }
 0x1b2   :  { %6685 = vmatprep.subr.bf16.mxu0 %v7275_v54  ;;  %6285 = vmatprep.subr.bf16.mxu1 %v7308_v5 }
 0x1b3   :  { %5821 = vmatmul.mubr.f32.vlgmr.msra.gmra.mrb[8].mxu0 %v7684_v16 }
 0x1b4   :  { %5823 = vmatprep.mubr.f32.mxu0 %v7690_v36  ;;  %6687 = vmatpush3.bf16.msra.mxu0 %v7275_v54 }
 0x1b5   :  { %6287 = vmatpush3.bf16.msra.mxu1 %v7308_v5  ;;  %6689 = vmatprep.subr.bf16.mxu0 %v7293_v63 }
 0x1b6   :  { %6289 = vmatprep.subr.bf16.mxu1 %v7344_v17 }
 0x1b7   :  { %5824 = vmatmul.mubr.f32.gmra.mrb[10].mxu0 %v7694_v14 }
 0x1b8   :  { %6691 = vmatpush3.bf16.msra.mxu0 %v7293_v63  ;;  %5858 = vmatprep.mubr.f32.mxu0 %v7681_v4 }
 0x1b9   :  { %6291 = vmatpush3.bf16.msra.mxu1 %v7344_v17  ;;  %6693 = vmatprep.subr.bf16.mxu0 %v7308_v5 }
 0x1ba   :  { %6293 = vmatprep.subr.bf16.mxu1 %v7358_v18 }
 0x1bc   :  { %6695 = vmatpush3.bf16.msra.mxu0 %v7308_v5  ;;  %v8413_v5 = vand.u32 4294901760, %v7870_v19 }
 0x1bd   :  { %6295 = vmatpush3.bf16.msra.mxu1 %v7358_v18  ;;  %6697 = vmatprep.subr.bf16.mxu0 %v7344_v17 }
 0x1be   :  { %6297 = vmatprep.subr.bf16.mxu1 %v7372_v25  ;;  %v8001_v28 = vsub.f32 %v7870_v19, %v8413_v5  ;;  %v8415_v5 = vand.u32 4294901760, %v7964_v53  ;;  %v8416_v19 = vand.u32 4294901760, %v7966_v8 }
 0x1c0   :  { %6699 = vmatpush3.bf16.msra.mxu0 %v7344_v17  ;;  %v1636_v17 = vsub.f32 %v7935_v32, %v8412_v24  ;;  %v8013_v24 = vsub.f32 %v7888_v46, %v1526_v56  ;;  %v8417_v46 = vand.u32 4294901760, %v7976_v27 }
 0x1c1   :  { %6299 = vmatpush3.bf16.msra.mxu1 %v7372_v25  ;;  %6701 = vmatprep.subr.bf16.mxu0 %v7358_v18 }
 0x1c2   :  { %6301 = vmatprep.subr.bf16.mxu1 %v7386_v30 }
 0x1c4   :  { %6703 = vmatpush3.bf16.msra.mxu0 %v7358_v18  ;;  %v8411_v18 = vand.u32 4294901760, %v7933_v42 }
 0x1c5   :  { %6303 = vmatpush3.bf16.msra.mxu1 %v7386_v30  ;;  %6705 = vmatprep.subr.bf16.mxu0 %v7372_v25 }
 0x1c6   :  { %6305 = vmatprep.subr.bf16.mxu1 %v7412_v39  ;;  %v1629_v48 = vsub.f32 %v7933_v42, %v8411_v18  ;;  %v8010_v18 = vsub.f32 %v7886_v43, %v1523_v52  ;;  %v1650_v52 = vsub.f32 %v7976_v27, %v8417_v46  ;;  %v8419_v46 = vand.u32 4294901760, %v7906_v62 }
 0x1c8   :  { %6707 = vmatpush3.bf16.msra.mxu0 %v7372_v25  ;;  %v8045_v63 = vsub.f32 %v7906_v62, %v8419_v46  ;;  %v1651_v56 = vand.u32 4294901760, %v1650_v52  ;;  %v8423_v62 = vand.u32 4294901760, %v8013_v24 }
 0x1c9   :  { %6307 = vmatpush3.bf16.msra.mxu1 %v7412_v39  ;;  %6709 = vmatprep.subr.bf16.mxu0 %v7386_v30 }
 0x1ca   :  { %6309 = vmatprep.subr.bf16.mxu1 %v7866_v58  ;;  %v1678_v46 = vsub.f32 %v8013_v24, %v8423_v62 }
 0x1cc   :  { %6711 = vmatpush3.bf16.msra.mxu0 %v7386_v30  ;;  %5343 = vmatmul.mubr.f32.vlgmr.msra.gmra.mrb[4].mxu1 %v7608_v6  ;;  %v8360_v30 = vand.u32 4294901760, %v7923_v21  ;;  %v1679_v52 = vand.u32 4294901760, %v1678_v46 }
 0x1cd   :  { %5345 = vmatprep.mubr.f32.mxu1 %v7623_v29  ;;  %6311 = vmatpush3.bf16.msra.mxu1 %v7866_v58 }
 0x1ce   :  { %6713 = vmatprep.subr.bf16.mxu0 %v7412_v39  ;;  %6313 = vmatprep.subr.bf16.mxu1 %v7882_v31 }
 0x1d0   :  { %6715 = vmatpush3.bf16.msra.mxu0 %v7412_v39  ;;  %5346 = vmatmul.mubr.f32.gmra.mrb[6].mxu1 %v7621_v26  ;;  %v8361_v39 = vand.u32 4294901760, %v7921_v45 }
 0x1d1   :  { %6315 = vmatpush3.bf16.msra.mxu1 %v7882_v31  ;;  %5380 = vmatprep.mubr.f32.mxu1 %v7641_v37  ;;  %v7929_v37 = vld [vmem:[#allocation6 + $0x60] sm:$0xff] }
 0x1d2   :  { %6717 = vmatprep.subr.bf16.mxu0 %v7866_v58  ;;  %6317 = vmatprep.subr.bf16.mxu1 %v7900_v51  ;;  %v7962_v50 = vpack.c.bf16 %v8360_v30, %v8361_v39  ;;  %v8409_v25 = vand.u32 4294901760, %v7929_v37  ;;  %v8410_v30 = vand.u32 4294901760, %v7931_v12 }
 0x1d3   :  { %5859 = vmatmul.mubr.f32.vlgmr.msra.gmra.mrb[8].mxu0 %v7684_v16 }
 0x1d4   :  { %5861 = vmatprep.mubr.f32.mxu0 %v7690_v36  ;;  %6719 = vmatpush3.bf16.msra.mxu0 %v7866_v58  ;;  %8406 = vst [vmem:[#allocation24_spill] sm:$0xff] %v7962_v50  ;;  %v7983_v39 = vpack.c.bf16 %v8410_v30, %v8409_v25  ;;  %v8371_v25 = vand.u32 4294901760, %v7971_v9  ;;  %v8021_v30 = vpack.c.bf16 %v8416_v19, %v8415_v5  ;;  %v8418_v19 = vand.u32 4294901760, %v7904_v61 }
 0x1d5   :  { %6319 = vmatpush3.bf16.msra.mxu1 %v7900_v51  ;;  %6721 = vmatprep.subr.bf16.mxu0 %v7882_v31 }
 0x1d6   :  { %6321 = vmatprep.subr.bf16.mxu1 %v7916_v7  ;;  %v1643_v43 = vsub.f32 %v7971_v9, %v8371_v25  ;;  %v8040_v25 = vsub.f32 %v7904_v61, %v8418_v19  ;;  %v8422_v61 = vand.u32 4294901760, %v8010_v18 }
 0x1d7   :  { %5862 = vmatmul.mubr.f32.gmra.mrb[10].mxu0 %v7694_v14 }
 0x1d8   :  { %6723 = vmatpush3.bf16.msra.mxu0 %v7882_v31  ;;  %5896 = vmatprep.mubr.f32.mxu0 %v7937_v60  ;;  %v8006_v60 = vsub.f32 %v7872_v22, %v8414_v23  ;;  %v1630_v22 = vand.u32 4294901760, %v1629_v48  ;;  %v1637_v23 = vand.u32 4294901760, %v1636_v17  ;;  %v1644_v5 = vand.u32 4294901760, %v1643_v43 }
 0x1d9   :  { %6323 = vmatpush3.bf16.msra.mxu1 %v7916_v7  ;;  %6725 = vmatprep.subr.bf16.mxu0 %v7900_v51  ;;  %v8420_v17 = vand.u32 4294901760, %v8001_v28  ;;  %v1671_v19 = vsub.f32 %v8010_v18, %v8422_v61  ;;  %v8379_v43 = vand.u32 4294901760, %v8040_v25  ;;  %v8073_v61 = vsub.f32 %v7923_v21, %v8425_v10 }
 0x1da   :  { %6325 = vmatprep.subr.bf16.mxu1 %v7944_v49  ;;  %v6340_v48 = vpack.c.bf16 %v1637_v23, %v1630_v22  ;;  %v8421_v22 = vand.u32 4294901760, %v8006_v60  ;;  %v6344_v62 = vpack.c.bf16 %v1651_v56, %v1644_v5  ;;  %v8426_v10 = vand.u32 4294901760, %v8045_v63 }
 0x1db   :  { %v1657_v54 = vsub.f32 %v8001_v28, %v8420_v17  ;;  %v8424_v17 = vand.u32 4294901760, %v7921_v45 }
 0x1dc   :  { %6727 = vmatpush3.bf16.msra.mxu0 %v7900_v51  ;;  %v1664_v23 = vsub.f32 %v8006_v60, %v8421_v22  ;;  %v1692_v21 = vsub.f32 %v8045_v63, %v8426_v10 }
 0x1dd   :  { %6327 = vmatpush3.bf16.msra.mxu1 %v7944_v49  ;;  %6729 = vmatprep.subr.bf16.mxu0 %v7916_v7  ;;  %v8068_v22 = vsub.f32 %v7921_v45, %v8424_v17  ;;  %v1658_v11 = vand.u32 4294901760, %v1657_v54  ;;  %v2992_v45 = vsub.f32 %v7739_v20, %v7799_v33  ;;  %v1672_v17 = vand.u32 4294901760, %v1671_v19 }
 0x1de   :  { %6329 = vmatprep.subr.bf16.mxu1 %v7962_v50  ;;  %v1665_v3 = vand.u32 4294901760, %v1664_v23  ;;  %v1685_v54 = vsub.f32 %v8040_v25, %v8379_v43  ;;  %v8427_v23 = vand.u32 4294901760, %v7929_v37  ;;  %v8428_v19 = vand.u32 4294901760, %v7931_v12 }
 0x1df   :  { %v8381_v56 = vand.u32 4294901760, %v8068_v22  ;;  %v8105_v10 = vand.u32 4294901760, %v2992_v45 }
 0x1e0   :  { %6731 = vmatpush3.bf16.msra.mxu0 %v7916_v7  ;;  %v6348_v5 = vpack.c.bf16 %v1665_v3, %v1658_v11  ;;  %v8099_v46 = vsub.f32 %v7931_v12, %v8428_v19  ;;  %v3002_v3 = vsub.f32 %v7747_v40, %v7808_v47  ;;  %v6352_v11 = vpack.c.bf16 %v1679_v52, %v1672_v17 }
 0x1e1   :  { %6331 = vmatpush3.bf16.msra.mxu1 %v7962_v50  ;;  %6733 = vmatprep.subr.bf16.mxu0 %v7944_v49  ;;  %v1699_v12 = vsub.f32 %v8068_v22, %v8381_v56  ;;  %v8429_v52 = vand.u32 4294901760, %v7964_v53 }
 0x1e2   :  { %6333 = vmatprep.subr.bf16.mxu1 %v7983_v39  ;;  %v8130_v19 = vand.u32 4294901760, %v3002_v3 }
 0x1e3   :  { %v8121_v17 = vsub.f32 %v7964_v53, %v8429_v52  ;;  %v1700_v56 = vand.u32 4294901760, %v1699_v12 }
 0x1e4   :  { %6735 = vmatpush3.bf16.msra.mxu0 %v7944_v49 }
 0x1e5   :  { %6335 = vmatpush3.bf16.msra.mxu1 %v7983_v39  ;;  %6737 = vmatprep.subr.bf16.mxu0 %v7962_v50 }
 0x1e6   :  { %6337 = vmatprep.subr.bf16.mxu1 %v8021_v30 }
 0x1e8   :  { %6739 = vmatpush3.bf16.msra.mxu0 %v7962_v50  ;;  %v2982_v50 = vsub.f32 %v7734_v15, %v7795_v38 }
 0x1e9   :  { %6339 = vmatpush3.bf16.msra.mxu1 %v8021_v30  ;;  %6741 = vmatprep.subr.bf16.mxu0 %v7983_v39 }
 0x1ea   :  { %6341 = vmatprep.subr.bf16.mxu1 %v6340_v48  ;;  %v8101_v43 = vand.u32 4294901760, %v2982_v50 }
 0x1ec   :  { %6743 = vmatpush3.bf16.msra.mxu0 %v7983_v39  ;;  %5381 = vmatmul.mubr.f32.vlgmr.msra.gmra.mrb[6].mxu1 %v7646_v2  ;;  %v8380_v2 = vand.u32 4294901760, %v8073_v61 }
 0x1ed   :  { %5383 = vmatprep.mubr.f32.mxu1 %v7655_v57  ;;  %6343 = vmatpush3.bf16.msra.mxu1 %v6340_v48  ;;  %v8094_v57 = vsub.f32 %v7929_v37, %v8427_v23  ;;  %v1686_v37 = vand.u32 4294901760, %v1685_v54  ;;  %v1693_v23 = vand.u32 4294901760, %v1692_v21  ;;  %v8430_v54 = vand.u32 4294901760, %v7966_v8 }
 0x1ee   :  { %6745 = vmatprep.subr.bf16.mxu0 %v8021_v30  ;;  %6345 = vmatprep.subr.bf16.mxu1 %v6344_v62  ;;  %v1706_v50 = vsub.f32 %v8073_v61, %v8380_v2 }
 0x1ef   :  { %v8126_v21 = vsub.f32 %v7966_v8, %v8430_v54  ;;  %v6356_v2 = vpack.c.bf16 %v1693_v23, %v1686_v37  ;;  %v8431_v8 = vand.u32 4294901760, %v8099_v46  ;;  %v1726_v54 = vand.u32 4294901760, %v8121_v17 }
 0x1f0   :  { %6747 = vmatpush3.bf16.msra.mxu0 %v8021_v30  ;;  %5384 = vmatmul.mubr.f32.gmra.mrb[8].mxu1 %v7658_v44  ;;  %v8382_v44 = vand.u32 4294901760, %v8094_v57  ;;  %v1707_v45 = vand.u32 4294901760, %v1706_v50 }
 0x1f1   :  { %6347 = vmatpush3.bf16.msra.mxu1 %v6344_v62  ;;  %5418 = vmatprep.mubr.f32.mxu1 %v7610_v1  ;;  %v1720_v52 = vsub.f32 %v8099_v46, %v8431_v8  ;;  %v1727_v12 = vsub.f32 %v8121_v17, %v1726_v54 }
 0x1f2   :  { %6749 = vmatprep.subr.bf16.mxu0 %v6340_v48  ;;  %6349 = vmatprep.subr.bf16.mxu1 %v6348_v5  ;;  %v1713_v53 = vsub.f32 %v8094_v57, %v8382_v44  ;;  %v6360_v3 = vpack.c.bf16 %v1707_v45, %v1700_v56  ;;  %v6372_v45 = vpack.c.bf16 %v7935_v32, %v7933_v42 }
 0x1f3   :  { %5897 = vmatmul.mubr.f32.vlgmr.msra.gmra.mrb[10].mxu0 %v8101_v43  ;;  %v1721_v23 = vand.u32 4294901760, %v1720_v52  ;;  %v1728_v8 = vand.u32 4294901760, %v1727_v12  ;;  %v8440_v52 = vand.u32 4294901760, %v8006_v60 }
 0x1f4   :  { %5899 = vmatprep.mubr.f32.mxu0 %v8105_v10  ;;  %6751 = vmatpush3.bf16.msra.mxu0 %v6340_v48  ;;  %v1733_v48 = vand.u32 4294901760, %v8126_v21  ;;  %v1714_v37 = vand.u32 4294901760, %v1713_v53  ;;  %v6396_v53 = vpack.c.bf16 %v8099_v46, %v8094_v57 }
 0x1f5   :  { %6351 = vmatpush3.bf16.msra.mxu1 %v6348_v5  ;;  %6753 = vmatprep.subr.bf16.mxu0 %v6344_v62 }
 0x1f6   :  { %6353 = vmatprep.subr.bf16.mxu1 %v6352_v11  ;;  %v1734_v50 = vsub.f32 %v8126_v21, %v1733_v48 }
 0x1f7   :  { %5900 = vmatmul.mubr.f32.gmra.mrb[12].mxu0 %v8130_v19 }
 0x1f8   :  { %6755 = vmatpush3.bf16.msra.mxu0 %v6344_v62  ;;  %5934 = vmatprep.mubr.f32.mxu0 %v7681_v4  ;;  %v6364_v62 = vpack.c.bf16 %v1721_v23, %v1714_v37  ;;  %v1735_v44 = vand.u32 4294901760, %v1734_v50  ;;  %v8443_v37 = vand.u32 4294901760, %v8013_v24 }
 0x1f9   :  { %6355 = vmatpush3.bf16.msra.mxu1 %v6352_v11  ;;  %6757 = vmatprep.subr.bf16.mxu0 %v6348_v5 }
 0x1fa   :  { %6357 = vmatprep.subr.bf16.mxu1 %v6356_v2  ;;  %v6368_v56 = vpack.c.bf16 %v1735_v44, %v1728_v8  ;;  %v6388_v44 = vpack.c.bf16 %v8045_v63, %v8040_v25 }
 0x1fc   :  { %6759 = vmatpush3.bf16.msra.mxu0 %v6348_v5  ;;  %v6376_v5 = vpack.c.bf16 %v7976_v27, %v7971_v9 }
 0x1fd   :  { %6359 = vmatpush3.bf16.msra.mxu1 %v6356_v2  ;;  %6761 = vmatprep.subr.bf16.mxu0 %v6352_v11 }
 0x1fe   :  { %6361 = vmatprep.subr.bf16.mxu1 %v6360_v3 }
 0x200   :  { %6763 = vmatpush3.bf16.msra.mxu0 %v6352_v11  ;;  %v6384_v11 = vpack.c.bf16 %v8013_v24, %v8010_v18  ;;  %v6464_v24 = vpack.c.bf16 %v1733_v48, %v1726_v54 }
 0x201   :  { %6363 = vmatpush3.bf16.msra.mxu1 %v6360_v3  ;;  %6765 = vmatprep.subr.bf16.mxu0 %v6356_v2 }
 0x202   :  { %6365 = vmatprep.subr.bf16.mxu1 %v6364_v62 }
 0x204   :  { %6767 = vmatpush3.bf16.msra.mxu0 %v6356_v2  ;;  %v6380_v2 = vpack.c.bf16 %v8006_v60, %v8001_v28  ;;  %v8444_v60 = vand.u32 4294901760, %v8040_v25  ;;  %v8449_v25 = vand.u32 4294901760, %v8099_v46 }
 0x205   :  { %6367 = vmatpush3.bf16.msra.mxu1 %v6364_v62  ;;  %6769 = vmatprep.subr.bf16.mxu0 %v6360_v3 }
 0x206   :  { %6369 = vmatprep.subr.bf16.mxu1 %v6368_v56 }
 0x208   :  { %6771 = vmatpush3.bf16.msra.mxu0 %v6360_v3 }
 0x209   :  { %6371 = vmatpush3.bf16.msra.mxu1 %v6368_v56  ;;  %6773 = vmatprep.subr.bf16.mxu0 %v6364_v62 }
 0x20a   :  { %6373 = vmatprep.subr.bf16.mxu1 %v6372_v45 }
 0x20c   :  { %6775 = vmatpush3.bf16.msra.mxu0 %v6364_v62  ;;  %5419 = vmatmul.mubr.f32.vlgmr.msra.gmra.mrb[6].mxu1 %v7608_v6 }
 0x20d   :  { %5421 = vmatprep.mubr.f32.mxu1 %v7623_v29  ;;  %6375 = vmatpush3.bf16.msra.mxu1 %v6372_v45 }
 0x20e   :  { %6777 = vmatprep.subr.bf16.mxu0 %v6368_v56  ;;  %6377 = vmatprep.subr.bf16.mxu1 %v6376_v5 }
 0x210   :  { %6779 = vmatpush3.bf16.msra.mxu0 %v6368_v56  ;;  %5422 = vmatmul.mubr.f32.gmra.mrb[8].mxu1 %v7621_v26 }
 0x211   :  { %6379 = vmatpush3.bf16.msra.mxu1 %v6376_v5  ;;  %5456 = vmatprep.mubr.f32.mxu1 %v7616_v13  ;;  %v6392_v13 = vpack.c.bf16 %v8073_v61, %v8068_v22 }
 0x212   :  { %6781 = vmatprep.subr.bf16.mxu0 %v6372_v45  ;;  %6381 = vmatprep.subr.bf16.mxu1 %v6380_v2 }
 0x213   :  { %5935 = vmatmul.mubr.f32.vlgmr.msra.gmra.mrb[10].mxu0 %v7684_v16 }
 0x214   :  { %5937 = vmatprep.mubr.f32.mxu0 %v7690_v36  ;;  %6783 = vmatpush3.bf16.msra.mxu0 %v6372_v45 }
 0x215   :  { %6383 = vmatpush3.bf16.msra.mxu1 %v6380_v2  ;;  %6785 = vmatprep.subr.bf16.mxu0 %v6376_v5 }
 0x216   :  { %6385 = vmatprep.subr.bf16.mxu1 %v6384_v11 }
 0x217   :  { %5938 = vmatmul.mubr.f32.gmra.mrb[12].mxu0 %v7694_v14 }
 0x218   :  { %6787 = vmatpush3.bf16.msra.mxu0 %v6376_v5  ;;  %5972 = vmatprep.mubr.f32.mxu0 %v7699_v35  ;;  %v6400_v35 = vpack.c.bf16 %v8126_v21, %v8121_v17 }
 0x219   :  { %6387 = vmatpush3.bf16.msra.mxu1 %v6384_v11  ;;  %6789 = vmatprep.subr.bf16.mxu0 %v6380_v2 }
 0x21a   :  { %6389 = vmatprep.subr.bf16.mxu1 %v6388_v44 }
 0x21c   :  { %6791 = vmatpush3.bf16.msra.mxu0 %v6380_v2 }
 0x21d   :  { %6391 = vmatpush3.bf16.msra.mxu1 %v6388_v44  ;;  %6793 = vmatprep.subr.bf16.mxu0 %v6384_v11 }
 0x21e   :  { %6393 = vmatprep.subr.bf16.mxu1 %v6392_v13 }
 0x220   :  { %6795 = vmatpush3.bf16.msra.mxu0 %v6384_v11 }
 0x221   :  { %6395 = vmatpush3.bf16.msra.mxu1 %v6392_v13  ;;  %6797 = vmatprep.subr.bf16.mxu0 %v6388_v44 }
 0x222   :  { %6397 = vmatprep.subr.bf16.mxu1 %v6396_v53 }
 0x224   :  { %6799 = vmatpush3.bf16.msra.mxu0 %v6388_v44 }
 0x225   :  { %6399 = vmatpush3.bf16.msra.mxu1 %v6396_v53  ;;  %6801 = vmatprep.subr.bf16.mxu0 %v6392_v13 }
 0x226   :  { %6401 = vmatprep.subr.bf16.mxu1 %v6400_v35 }
 0x228   :  { %6803 = vmatpush3.bf16.msra.mxu0 %v6392_v13 }
 0x229   :  { %6403 = vmatpush3.bf16.msra.mxu1 %v6400_v35  ;;  %6805 = vmatprep.subr.bf16.mxu0 %v6396_v53 }
 0x22a   :  { %6405 = vmatprep.subr.bf16.mxu1 %v7866_v58 }
 0x22c   :  { %6807 = vmatpush3.bf16.msra.mxu0 %v6396_v53  ;;  %5457 = vmatmul.mubr.f32.vlgmr.msra.gmra.mrb[6].mxu1 %v7613_v55  ;;  %v8432_v55 = vld [vmem:[#allocation24_spill] sm:$0xff] }
 0x22d   :  { %5459 = vmatprep.mubr.f32.mxu1 %v7634_v0  ;;  %6407 = vmatpush3.bf16.msra.mxu1 %v7866_v58 }
 0x22e   :  { %6809 = vmatprep.subr.bf16.mxu0 %v6400_v35  ;;  %6409 = vmatprep.subr.bf16.mxu1 %v7882_v31 }
 0x230   :  { %6811 = vmatpush3.bf16.msra.mxu0 %v6400_v35  ;;  %5460 = vmatmul.mubr.f32.gmra.mrb[8].mxu1 %v7631_v59  ;;  %v8434_v59 = vand.u32 4294901760, %v7935_v32  ;;  %v8439_v32 = vand.u32 4294901760, %v8001_v28  ;;  %v8445_v28 = vand.u32 4294901760, %v8045_v63  ;;  %v8448_v63 = vand.u32 4294901760, %v8094_v57 }
 0x231   :  { %6411 = vmatpush3.bf16.msra.mxu1 %v7882_v31  ;;  %5494 = vmatprep.mubr.f32.mxu1 %v7626_v34  ;;  %v8433_v34 = vand.u32 4294901760, %v7933_v42  ;;  %v8438_v42 = vld [vmem:[#allocation22_spill] sm:$0xff] }
 0x232   :  { %6813 = vmatprep.subr.bf16.mxu0 %v7866_v58  ;;  %6413 = vmatprep.subr.bf16.mxu1 %v7900_v51  ;;  %v6444_v3 = vpack.c.bf16 %v8440_v52, %v8439_v32  ;;  %v6452_v12 = vpack.c.bf16 %v8445_v28, %v8444_v60 }
 0x233   :  { %5973 = vmatmul.mubr.f32.vlgmr.msra.gmra.mrb[10].mxu0 %v7734_v15  ;;  %v6436_v0 = vpack.c.bf16 %v8434_v59, %v8433_v34  ;;  %v8435_v15 = vand.u32 4294901760, %v7971_v9  ;;  %v8441_v9 = vld [vmem:[#allocation21_spill] sm:$0xff] }
 0x234   :  { %5975 = vmatprep.mubr.f32.mxu0 %v7739_v20  ;;  %6815 = vmatpush3.bf16.msra.mxu0 %v7866_v58  ;;  %v8436_v20 = vand.u32 4294901760, %v7976_v27  ;;  %v8442_v27 = vand.u32 4294901760, %v8010_v18 }
 0x235   :  { %6415 = vmatpush3.bf16.msra.mxu1 %v7900_v51  ;;  %6817 = vmatprep.subr.bf16.mxu0 %v7882_v31 }
 0x236   :  { %6417 = vmatprep.subr.bf16.mxu1 %v7916_v7  ;;  %v6448_v23 = vpack.c.bf16 %v8443_v37, %v8442_v27 }
 0x237   :  { %5976 = vmatmul.mubr.f32.gmra.mrb[12].mxu0 %v7747_v40  ;;  %v6440_v40 = vpack.c.bf16 %v8436_v20, %v8435_v15 }
 0x238   :  { %6819 = vmatpush3.bf16.msra.mxu0 %v7882_v31  ;;  %6010 = vmatprep.mubr.f32.mxu0 %v7752_v41  ;;  %v8437_v41 = vld [vmem:[#allocation20_spill] sm:$0xff] }
 0x239   :  { %6419 = vmatpush3.bf16.msra.mxu1 %v7916_v7  ;;  %6821 = vmatprep.subr.bf16.mxu0 %v7900_v51 }
 0x23a   :  { %6421 = vmatprep.subr.bf16.mxu1 %v7944_v49 }
 0x23c   :  { %6823 = vmatpush3.bf16.msra.mxu0 %v7900_v51 }
 0x23d   :  { %6423 = vmatpush3.bf16.msra.mxu1 %v7944_v49  ;;  %6825 = vmatprep.subr.bf16.mxu0 %v7916_v7 }
 0x23e   :  { %6425 = vmatprep.subr.bf16.mxu1 %v8432_v55 }
 0x240   :  { %6827 = vmatpush3.bf16.msra.mxu0 %v7916_v7 }
 0x241   :  { %6427 = vmatpush3.bf16.msra.mxu1 %v8432_v55  ;;  %6829 = vmatprep.subr.bf16.mxu0 %v7944_v49 }
 0x242   :  { %6429 = vmatprep.subr.bf16.mxu1 %v7983_v39 }
 0x244   :  { %6831 = vmatpush3.bf16.msra.mxu0 %v7944_v49 }
 0x245   :  { %6431 = vmatpush3.bf16.msra.mxu1 %v7983_v39  ;;  %6833 = vmatprep.subr.bf16.mxu0 %v8432_v55 }
 0x246   :  { %6433 = vmatprep.subr.bf16.mxu1 %v8021_v30 }
 0x248   :  { %6835 = vmatpush3.bf16.msra.mxu0 %v8432_v55 }
 0x249   :  { %6435 = vmatpush3.bf16.msra.mxu1 %v8021_v30  ;;  %6837 = vmatprep.subr.bf16.mxu0 %v7983_v39 }
 0x24a   :  { %6437 = vmatprep.subr.bf16.mxu1 %v6436_v0 }
 0x24c   :  { %6839 = vmatpush3.bf16.msra.mxu0 %v7983_v39  ;;  %5495 = vmatmul.mubr.f32.vlgmr.msra.gmra.mrb[6].mxu1 %v8437_v41 }
 0x24d   :  { %5497 = vmatprep.mubr.f32.mxu1 %v8438_v42  ;;  %6439 = vmatpush3.bf16.msra.mxu1 %v6436_v0 }
 0x24e   :  { %6841 = vmatprep.subr.bf16.mxu0 %v8021_v30  ;;  %6441 = vmatprep.subr.bf16.mxu1 %v6440_v40 }
 0x250   :  { %6843 = vmatpush3.bf16.msra.mxu0 %v8021_v30  ;;  %5498 = vmatmul.mubr.f32.gmra.mrb[8].mxu1 %v8441_v9 }
 0x251   :  { %6443 = vmatpush3.bf16.msra.mxu1 %v6440_v40  ;;  %5532 = vmatprep.mubr.f32.mxu1 %v7610_v1 }
 0x252   :  { %6845 = vmatprep.subr.bf16.mxu0 %v6436_v0  ;;  %6445 = vmatprep.subr.bf16.mxu1 %v6444_v3 }
 0x253   :  { %6011 = vmatmul.mubr.f32.vlgmr.msra.gmra.mrb[10].mxu0 %v7795_v38  ;;  %v8446_v38 = vand.u32 4294901760, %v8068_v22 }
 0x254   :  { %6013 = vmatprep.mubr.f32.mxu0 %v7799_v33  ;;  %6847 = vmatpush3.bf16.msra.mxu0 %v6436_v0  ;;  %v8447_v33 = vand.u32 4294901760, %v8073_v61 }
 0x255   :  { %6447 = vmatpush3.bf16.msra.mxu1 %v6444_v3  ;;  %6849 = vmatprep.subr.bf16.mxu0 %v6440_v40 }
 0x256   :  { %6449 = vmatprep.subr.bf16.mxu1 %v6448_v23  ;;  %v6456_v18 = vpack.c.bf16 %v8447_v33, %v8446_v38 }
 0x257   :  { %6014 = vmatmul.mubr.f32.gmra.mrb[12].mxu0 %v7808_v47  ;;  %v6460_v47 = vpack.c.bf16 %v8449_v25, %v8448_v63 }
 0x258   :  { %6851 = vmatpush3.bf16.msra.mxu0 %v6440_v40  ;;  %6048 = vmatprep.mubr.f32.mxu0 %v7681_v4 }
 0x259   :  { %6451 = vmatpush3.bf16.msra.mxu1 %v6448_v23  ;;  %6853 = vmatprep.subr.bf16.mxu0 %v6444_v3 }
 0x25a   :  { %6453 = vmatprep.subr.bf16.mxu1 %v6452_v12 }
 0x25c   :  { %6855 = vmatpush3.bf16.msra.mxu0 %v6444_v3 }
 0x25d   :  { %6455 = vmatpush3.bf16.msra.mxu1 %v6452_v12  ;;  %6857 = vmatprep.subr.bf16.mxu0 %v6448_v23 }
 0x25e   :  { %6457 = vmatprep.subr.bf16.mxu1 %v6456_v18 }
 0x260   :  { %6859 = vmatpush3.bf16.msra.mxu0 %v6448_v23 }
 0x261   :  { %6459 = vmatpush3.bf16.msra.mxu1 %v6456_v18  ;;  %6861 = vmatprep.subr.bf16.mxu0 %v6452_v12 }
 0x262   :  { %6461 = vmatprep.subr.bf16.mxu1 %v6460_v47 }
 0x264   :  { %6863 = vmatpush3.bf16.msra.mxu0 %v6452_v12 }
 0x265   :  { %6463 = vmatpush3.bf16.msra.mxu1 %v6460_v47  ;;  %6865 = vmatprep.subr.bf16.mxu0 %v6456_v18 }
 0x266   :  { %6465 = vmatprep.subr.bf16.mxu1 %v6464_v24 }
 0x268   :  { %6867 = vmatpush3.bf16.msra.mxu0 %v6456_v18 }
 0x269   :  { %6467 = vmatpush3.bf16.msra.mxu1 %v6464_v24  ;;  %6869 = vmatprep.subr.bf16.mxu0 %v6460_v47 }
 0x26a   :  { %6469 = vmatprep.subr.bf16.mxu1 %v7866_v58 }
 0x26c   :  { %6871 = vmatpush3.bf16.msra.mxu0 %v6460_v47  ;;  %5533 = vmatmul.mubr.f32.vlgmr.msra.gmra.mrb[6].mxu1 %v7608_v6 }
 0x26d   :  { %5535 = vmatprep.mubr.f32.mxu1 %v7623_v29  ;;  %6471 = vmatpush3.bf16.msra.mxu1 %v7866_v58 }
 0x26e   :  { %6873 = vmatprep.subr.bf16.mxu0 %v6464_v24  ;;  %6473 = vmatprep.subr.bf16.mxu1 %v7882_v31 }
 0x270   :  { %6875 = vmatpush3.bf16.msra.mxu0 %v6464_v24  ;;  %5536 = vmatmul.mubr.f32.gmra.mrb[8].mxu1 %v7621_v26 }
 0x271   :  { %6475 = vmatpush3.bf16.msra.mxu1 %v7882_v31  ;;  %5570 = vmatprep.mubr.f32.mxu1 %v7610_v1  ;;  %v8450_v1 = vld [vmem:[#allocation12_spill] sm:$0xff] }
 0x272   :  { %6877 = vmatprep.subr.bf16.mxu0 %v7866_v58  ;;  %6477 = vmatprep.subr.bf16.mxu1 %v7900_v51 }
 0x273   :  { %6049 = vmatmul.mubr.f32.vlgmr.msra.gmra.mrb[10].mxu0 %v7684_v16 }
 0x274   :  { %6051 = vmatprep.mubr.f32.mxu0 %v7690_v36  ;;  %6879 = vmatpush3.bf16.msra.mxu0 %v7866_v58  ;;  %v8452_v58 = vld [vmem:[#allocation23_spill] sm:$0xff] }
 0x275   :  { %6479 = vmatpush3.bf16.msra.mxu1 %v7900_v51  ;;  %6881 = vmatprep.subr.bf16.mxu0 %v7882_v31 }
 0x276   :  { %6481 = vmatprep.subr.bf16.mxu1 %v7916_v7 }
 0x277   :  { %6052 = vmatmul.mubr.f32.gmra.mrb[12].mxu0 %v7694_v14 }
 0x278   :  { %6883 = vmatpush3.bf16.msra.mxu0 %v7882_v31  ;;  %6086 = vmatprep.mubr.f32.mxu0 %v7681_v4  ;;  %v8451_v4 = vld [vmem:[#allocation13_spill] sm:$0xff] }
 0x279   :  { %6483 = vmatpush3.bf16.msra.mxu1 %v7916_v7  ;;  %6885 = vmatprep.subr.bf16.mxu0 %v7900_v51 }
 0x27a   :  { %6485 = vmatprep.subr.bf16.mxu1 %v7944_v49 }
 0x27c   :  { %6887 = vmatpush3.bf16.msra.mxu0 %v7900_v51  ;;  %v8458_v51 = vld [vmem:[#allocation19_spill] sm:$0xff] }
 0x27d   :  { %6487 = vmatpush3.bf16.msra.mxu1 %v7944_v49  ;;  %6889 = vmatprep.subr.bf16.mxu0 %v7916_v7 }
 0x27e   :  { %6489 = vmatprep.subr.bf16.mxu1 %v8432_v55 }
 0x280   :  { %6891 = vmatpush3.bf16.msra.mxu0 %v7916_v7 }
 0x281   :  { %6491 = vmatpush3.bf16.msra.mxu1 %v8432_v55  ;;  %6893 = vmatprep.subr.bf16.mxu0 %v7944_v49 }
 0x282   :  { %6493 = vmatprep.subr.bf16.mxu1 %v7983_v39 }
 0x284   :  { %6895 = vmatpush3.bf16.msra.mxu0 %v7944_v49  ;;  %v8453_v49 = vld [vmem:[#allocation14_spill] sm:$0xff] }
 0x285   :  { %6495 = vmatpush3.bf16.msra.mxu1 %v7983_v39  ;;  %6897 = vmatprep.subr.bf16.mxu0 %v8432_v55 }
 0x286   :  { %6497 = vmatprep.subr.bf16.mxu1 %v8021_v30 }
 0x288   :  { %6899 = vmatpush3.bf16.msra.mxu0 %v8432_v55 }
 0x289   :  { %6499 = vmatpush3.bf16.msra.mxu1 %v8021_v30  ;;  %6901 = vmatprep.subr.bf16.mxu0 %v7983_v39 }
 0x28a   :  { %6525 = vmatprep.subr.bf16.mxu1 %v8450_v1 }
 0x28c   :  { %6903 = vmatpush3.bf16.msra.mxu0 %v7983_v39  ;;  %5571 = vmatmul.mubr.f32.vlgmr.msra.gmra.mrb[6].mxu1 %v7608_v6  ;;  %v8454_v39 = vld [vmem:[#allocation15_spill] sm:$0xff]  ;;  %v8455_v6 = vld [vmem:[#allocation16_spill] sm:$0xff] }
 0x28d   :  { %5573 = vmatprep.mubr.f32.mxu1 %v7623_v29  ;;  %6527 = vmatpush3.bf16.msra.mxu1 %v8450_v1 }
 0x28e   :  { %6905 = vmatprep.subr.bf16.mxu0 %v8021_v30  ;;  %6529 = vmatprep.subr.bf16.mxu1 %v8451_v4 }
 0x290   :  { %6907 = vmatpush3.bf16.msra.mxu0 %v8021_v30  ;;  %5574 = vmatmul.mubr.f32.gmra.mrb[8].mxu1 %v7621_v26  ;;  %v8456_v26 = vld [vmem:[#allocation17_spill] sm:$0xff] }
 0x291   :  { %6531 = vmatpush3.bf16.msra.mxu1 %v8451_v4  ;;  %5668 = vmatprep.mubr.f32.mxu1 %v8452_v58 }
 0x292   :  { %6533 = vmatprep.subr.bf16.mxu1 %v8453_v49 }
 0x293   :  { %6087 = vmatmul.mubr.f32.vlgmr.msra.gmra.mrb[10].mxu0 %v7684_v16  ;;  %v8457_v16 = vld [vmem:[#allocation18_spill] sm:$0xff] }
 0x294   :  { %6089 = vmatprep.mubr.f32.mxu0 %v7690_v36 }
 0x295   :  { %6535 = vmatpush3.bf16.msra.mxu1 %v8453_v49 }
 0x296   :  { %6537 = vmatprep.subr.bf16.mxu1 %v8454_v39 }
 0x297   :  { %6090 = vmatmul.mubr.f32.gmra.mrb[12].mxu0 %v7694_v14 }
 0x299   :  { %6539 = vmatpush3.bf16.msra.mxu1 %v8454_v39 }
 0x29a   :  { %6541 = vmatprep.subr.bf16.mxu1 %v8455_v6 }
 0x29d   :  { %6543 = vmatpush3.bf16.msra.mxu1 %v8455_v6 }
 0x29e   :  { %6545 = vmatprep.subr.bf16.mxu1 %v8456_v26 }
 0x29f   :  { %v5344_v29 = vpop.f32.mrb[4].mxu1 }
 0x2a0   :  { %v1482_v31 = vpop.f32.mrb[5].mxu1 }
 0x2a1   :  { %6547 = vmatpush3.bf16.msra.mxu1 %v8456_v26 }
 0x2a2   :  { %6549 = vmatprep.subr.bf16.mxu1 %v8457_v16 }
 0x2a5   :  { %6551 = vmatpush3.bf16.msra.mxu1 %v8457_v16 }
 0x2a6   :  { %v5860_v36 = vpop.f32.mrb[8].mxu0  ;;  %6553 = vmatprep.subr.bf16.mxu1 %v8458_v51 }
 0x2a7   :  { %v3636_v14 = vpop.f32.mrb[9].mxu0 }
 0x2a9   :  { %6555 = vmatpush3.bf16.msra.mxu1 %v8458_v51 }
 0x2ac   :  { %5669 = vmatmul.mubr.f32.vlgmr.msra.gmra.mrb[10].mxu1 %v8101_v43 }
 0x2ad   :  { %5671 = vmatprep.mubr.f32.mxu1 %v8105_v10 }
 0x2b0   :  { %5672 = vmatmul.mubr.f32.gmra.mrb[12].mxu1 %v8130_v19 }
 0x35f   :  { %v5572_v7 = vpop.f32.mrb[6].mxu1 }
 0x360   :  { %v2252_v30 = vpop.f32.mrb[7].mxu1  ;;  %v2281_v17 = vmul.f32 %v5572_v7, %v5572_v7 }
 0x361   :  { %v2280_v48 = vmul.f32 %v2252_v30, %v2252_v30 }
 0x363   :  { %v5575_v22 = vpop.f32.mrb[8].mxu1 }
 0x364   :  { %v2275_v61 = vsub.f32 %v5344_v29, %v5575_v22  ;;  %v2264_v57 = vpop.f32.mrb[9].mxu1 }
 0x365   :  { %v2274_v46 = vsub.f32 %v1482_v31, %v2264_v57 }
 0x366   :  { %v2279_v21 = vmul.f32 %v2275_v61, %v2275_v61  ;;  %v6088_v54 = vpop.f32.mrb[10].mxu0 }
 0x367   :  { %v2278_v50 = vmul.f32 %v2274_v46, %v2274_v46  ;;  %v4406_v62 = vpop.f32.mrb[11].mxu0 }
 0x368   :  { %v2283_v8 = vadd.f32 %v2281_v17, %v2279_v21 }
 0x369   :  { %v2282_v56 = vadd.f32 %v2280_v48, %v2278_v50 }
 0x36a   :  { %v6091_v45 = vpop.f32.mrb[12].mxu0  ;;  %7039 = vrsqrt.f32 %v2283_v8  ;;  %vm2293_vm2 = vcmp.eq.f32.partialorder %v2283_v8, inf  ;;  %vm2295_vm3 = vcmp.eq.f32.partialorder %v2283_v8, 0.0  ;;  %v2296_v9 = vand.u32 2147483648, %v2283_v8 }
 0x36b   :  { %v4418_v43 = vpop.f32.mrb[13].mxu0  ;;  %7041 = vrsqrt.f32 %v2282_v56  ;;  %vm2286_vm1 = vcmp.eq.f32.partialorder %v2282_v56, inf  ;;  %vm2288_vm4 = vcmp.eq.f32.partialorder %v2282_v56, 0.0  ;;  %v2289_v37 = vand.u32 2147483648, %v2282_v56 }
 0x374   :  { %v7040_v41 = vpop.eup %7039 }
 0x375   :  { %v7042_v42 = vpop.eup %7041  ;;  %v2292_v32 = vmul.f32 %v7040_v41, %v2283_v8 }
 0x376   :  { %v2285_v52 = vmul.f32 %v7042_v42, %v2282_v56 }
 0x377   :  { %v2294_v23 = vsel %vm2293_vm2, %v2283_v8, %v2292_v32 }
 0x378   :  { %v2287_v28 = vsel %vm2286_vm1, %v2282_v56, %v2285_v52  ;;  %v2297_v63 = vsel %vm2295_vm3, %v2296_v9, %v2294_v23 }
 0x379   :  { %v2290_v24 = vsel %vm2288_vm4, %v2289_v37, %v2287_v28 }
 0x37f   :  { %v5670_v5 = vpop.f32.mrb[10].mxu1 }
 0x380   :  { %v6912_v10 = vadd.f32 %v5860_v36, %v5670_v5  ;;  %v2975_v2 = vpop.f32.mrb[11].mxu1 }
 0x381   :  { %v6913_v19 = vadd.f32 %v3636_v14, %v2975_v2 }
 0x382   :  { %v4429_v11 = vsub.f32 %v6912_v10, %v6091_v45 }
 0x383   :  { %v4428_v44 = vsub.f32 %v6913_v19, %v4418_v43  ;;  %v5673_v13 = vpop.f32.mrb[12].mxu1 }
 0x384   :  { %v6914_v53 = vadd.f32 %v6088_v54, %v5673_v13  ;;  %v2995_v35 = vpop.f32.mrb[13].mxu1  ;;  %v4433_v34 = vmul.f32 %v4429_v11, %v4429_v11 }
 0x385   :  { %v6915_v55 = vadd.f32 %v4406_v62, %v2995_v35  ;;  %v4432_v0 = vmul.f32 %v4428_v44, %v4428_v44 }
 0x386   :  { %v4435_v59 = vmul.f32 %v6914_v53, %v6914_v53 }
 0x387   :  { %v4434_v15 = vmul.f32 %v6915_v55, %v6915_v55 }
 0x388   :  { %v4437_v20 = vadd.f32 %v4435_v59, %v4433_v34 }
 0x389   :  { %v4436_v40 = vadd.f32 %v4434_v15, %v4432_v0 }
 0x38a   :  { %7043 = vrsqrt.f32 %v4437_v20  ;;  %vm4447_vm5 = vcmp.eq.f32.partialorder %v4437_v20, inf  ;;  %v4450_v38 = vand.u32 2147483648, %v4437_v20  ;;  %vm4449_vm7 = vcmp.eq.f32.partialorder %v4437_v20, 0.0 }
 0x38b   :  { %7045 = vrsqrt.f32 %v4436_v40  ;;  %vm4440_vm6 = vcmp.eq.f32.partialorder %v4436_v40, inf  ;;  %v4443_v33 = vand.u32 2147483648, %v4436_v40  ;;  %vm4442_vm8 = vcmp.eq.f32.partialorder %v4436_v40, 0.0 }
 0x394   :  { %v7044_v3 = vpop.eup %7043 }
 0x395   :  { %v7046_v27 = vpop.eup %7045  ;;  %v4446_v60 = vmul.f32 %v7044_v3, %v4437_v20 }
 0x396   :  { %v4439_v12 = vmul.f32 %v7046_v27, %v4436_v40 }
 0x397   :  { %v4448_v18 = vsel %vm4447_vm5, %v4437_v20, %v4446_v60 }
 0x398   :  { %v4441_v25 = vsel %vm4440_vm6, %v4436_v40, %v4439_v12  ;;  %v4451_v47 = vsel %vm4449_vm7, %v4450_v38, %v4448_v18 }
 0x399   :  { %v4444_v1 = vsel %vm4442_vm8, %v4443_v33, %v4441_v25  ;;  %v4455_v4 = vsub.f32 %v2297_v63, %v4451_v47 }
 0x39a   :  { %v4454_v58 = vsub.f32 %v2290_v24, %v4444_v1 }
 0x39b   :  { %v4457_v49 = vand.u32 2147483647, %v4455_v4 }
 0x39c   :  { %v4456_v39 = vand.u32 2147483647, %v4454_v58 }
 0x39e   :  { %v4467_v6 = vadd.f32 %v4457_v49, %v4456_v39 }
 0x3a0   :  { %4468 = vadd.xlane.f32.xlu0 %v4467_v6 }
 0x42d   :  { %v4469_v26 = vpop.xlane.xlu0 %4468 }
 0x42e   :  { %v4470_v29 = vrot.slane %v4469_v26, 4 }
 0x430   :  { %v4471_v31 = vadd.f32 %v4470_v29, %v4469_v26 }
 0x432   :  { %v4472_v16 = vrot.slane %v4471_v31, 2 }
 0x434   :  { %v4473_v36 = vadd.f32 %v4472_v16, %v4471_v31 }
 0x436   :  { %v4474_v51 = vrot.slane %v4473_v36, 1 }
 0x438   :  { %v4475_v14 = vadd.f32 %v4474_v51, %v4473_v36 }
 0x43a   :  { %7032 = vpush %v4475_v14 }
 0x46b   :  { %s7033_s7 = spop %7032 }
 0x46c   :  { %v4477_v7 = vstv %s7033_s7 }
 0x46d   :  { %4479 = vst [vmem:[#allocation8] sm:$0xff] %v4477_v7 }
 0x46e   :  { %7102 = shalt.err (!%p7099_p6)
}
 0x46f   :  { %s7103_s11 = scalar_lea.hbm %s8336_s5, 128 }
 0x470   :  { %p7104_p7 = scmp.ne.s32.totalorder %s8336_s5, %s7103_s11  ;;  %p7107_p8 = scmp.lt.u32.totalorder %s7103_s11, %s8336_s5 }
 0x472   :  { %p7109_p9 = pnand %p7107_p8, %p7104_p7 }
 0x474   :  { %7112 = shalt.err (!%p7109_p9)
}
 0x475   :  { %4489 = dma.vmem_to_hbm [thread:$0]  %s4487_s6, 128, %s8336_s5, [#allocation5]  }
 0x476   :  { %7117 = dma.done.wait [#allocation5], 128  }
 0x477   :  { %7118 = vsyncadd [#allocation5], 4294967168 }
 0x478   :  { %4493 = vsyncpa [#allocation4], 1 }
 0x479   :  { %4494 = vsyncpa [#allocation7], 1 }
 0x47a   :  { %4495 = vsyncpa [#allocation5], 1 }

</bundles_post_ra>
